<compile_context>
chip_gen: v7x
topology: tpu7x:2x2x1
jax: 0.10.0
libtpu: 0.0.40
codegen_flags: <defaults>
</compile_context>

<pallas_src>
import functools

import jax
import jax.numpy as jnp
from jax.experimental import pallas as pl
from jax.experimental.pallas import tpu as pltpu


def _round_up(x, m):
    return (x + m - 1) // m * m


# ---------------------------------------------------------------------------
# Pass 1: tiled im2col-matmul (bf16 operands, f32 accumulate directly in the
# resident output block) + conv bias + per-tile per-channel sum / sumsq.
# ---------------------------------------------------------------------------
def _conv_stats_kernel(p_ref, w_ref, b_ref, y_ref, s_ref, *,
                       n_valid_rows, tile_m, apply_mask):
    m = pl.program_id(0)
    k = pl.program_id(1)

    @pl.when(k == 0)
    def _():
        y_ref[...] = jnp.zeros_like(y_ref)

    # f32 accumulation straight into the VMEM-resident output block.
    y_ref[...] += jnp.dot(p_ref[...], w_ref[...],
                          preferred_element_type=jnp.float32)

    @pl.when(k == pl.num_programs(1) - 1)
    def _():
        y = y_ref[...] + b_ref[...]                    # (tile_m, Cp), f32
        y_ref[...] = y                                 # conv + bias result
        if apply_mask:
            # Only the (possibly) padded last M tile needs masking so the
            # batch statistics only see real (n, ho, wo) positions.
            row_ids = (jax.lax.broadcasted_iota(jnp.int32, y.shape, 0)
                       + m * tile_m)
            ym = jnp.where(row_ids < n_valid_rows, y, 0.0)
        else:
            ym = y
        s = jnp.sum(ym, axis=0, keepdims=True)         # (1, Cp)
        ss = jnp.sum(ym * ym, axis=0, keepdims=True)   # (1, Cp)
        rid = jax.lax.broadcasted_iota(jnp.int32, (8, y.shape[1]), 0)
        blk = jnp.where(rid == 0, s, jnp.where(rid == 1, ss, 0.0))
        s_ref[...] = blk[None]                         # (1, 8, Cp)


# ---------------------------------------------------------------------------
# Pass 2: per-tile BatchNorm apply (precomputed scale/shift) + ReLU.
# ---------------------------------------------------------------------------
def _bn_relu_kernel(y_ref, scale_ref, shift_ref, o_ref):
    o_ref[...] = jnp.maximum(
        y_ref[...] * scale_ref[...] + shift_ref[...], 0.0).astype(o_ref.dtype)


def conv_bn_relu(x, weight, bias, gamma, beta, *, stride=1, padding=0,
                 eps=1e-3, max_tile_m=1024):
    """Forward pass of the PyTorch `Conv` module (Conv2d -> BN(train) -> ReLU).

    x      : (N, Cin, H, W) float32 NCHW
    weight : (Cout, Cin, kh, kw)
    bias, gamma, beta : (Cout,)
    returns: (N, Cout, Ho, Wo) NCHW
    """
    N, Cin, H, W = x.shape
    Cout, _, kh, kw = weight.shape
    Ho = (H + 2 * padding - kh) // stride + 1
    Wo = (W + 2 * padding - kw) // stride + 1
    M = N * Ho * Wo
    K = Cin * kh * kw

    # --- im2col glue (fused under the surrounding jit) ----------------------
    # TODO(synk): gather the kh*kw taps inside the kernel (overlapping window
    # reads) instead of materializing the im2col patch matrix in HBM.
    xp = jnp.pad(x, ((0, 0), (0, 0), (padding, padding), (padding, padding)))
    taps = []
    for i in range(kh):
        for j in range(kw):
            taps.append(xp[:, :, i:i + stride * Ho:stride,
                              j:j + stride * Wo:stride])      # (N,Cin,Ho,Wo)
    patches = jnp.stack(taps, axis=0)                         # (kh*kw,N,Cin,Ho,Wo)
    patches = patches.transpose(1, 3, 4, 2, 0)                # (N,Ho,Wo,Cin,kh*kw)
    patches = patches.reshape(M, K)

    wmat = weight.reshape(Cout, K).T                          # (K, Cout)

    # --- TPU-friendly padded / tiled shapes ----------------------------------
    Cp = _round_up(Cout, 128)
    Kp = _round_up(K, 128)
    if Kp <= 512:                       # small K: single MXU pass, no K grid
        tk = Kp
    elif Kp % 512 == 0:
        tk = 512
    elif Kp % 256 == 0:
        tk = 256
    else:
        tk = 128
    n_k = Kp // tk

    # Pick the M tile from a VMEM budget (~20 MiB of pipelined blocks, safe
    # for v7x's 64 MiB physical VMEM and v5e/v6e defaults).
    budget = 20 * 1024 * 1024
    fixed = 2 * tk * Cp * 2 + 4 * Cp * 4 + 2 * 8 * Cp * 4
    per_row = 2 * tk * 2 + 2 * Cp * 4
    tile_m = max(128, min(int(max_tile_m), (budget - fixed) // per_row))
    tile_m = (tile_m // 128) * 128
    if _round_up(M, 16) <= tile_m:
        tile_m = _round_up(M, 16)       # single M tile, minimal row padding
    Mp = _round_up(M, tile_m)
    n_m = Mp // tile_m
    apply_mask = (Mp != M)

    bf16, f32 = jnp.bfloat16, jnp.float32
    patches_p = jnp.pad(patches.astype(bf16), ((0, Mp - M), (0, Kp - K)))
    w_p = jnp.pad(wmat.astype(bf16), ((0, Kp - K), (0, Cp - Cout)))
    b_p = jnp.pad(bias.astype(f32), (0, Cp - Cout)).reshape(1, Cp)
    g_p = jnp.pad(gamma.astype(f32), (0, Cp - Cout))
    be_p = jnp.pad(beta.astype(f32), (0, Cp - Cout))

    vmem_est = (2 * tile_m * tk * 2 + 2 * tk * Cp * 2 + 4 * Cp * 4
                + 2 * tile_m * Cp * 4 + 2 * 8 * Cp * 4)
    vmem_limit = int(min(max(2 * vmem_est, 16 * 1024 * 1024),
                         48 * 1024 * 1024))

    kernel1 = functools.partial(_conv_stats_kernel, n_valid_rows=M,
                                tile_m=tile_m, apply_mask=apply_mask)

    y_conv, stats = pl.pallas_call(
        kernel1,
        out_shape=(jax.ShapeDtypeStruct((Mp, Cp), f32),
                   jax.ShapeDtypeStruct((n_m, 8, Cp), f32)),
        grid_spec=pltpu.PrefetchScalarGridSpec(
            num_scalar_prefetch=0,
            grid=(n_m, n_k),
            in_specs=[
                pl.BlockSpec((tile_m, tk), lambda m, k: (m, k)),   # patches
                pl.BlockSpec((tk, Cp), lambda m, k: (k, 0)),       # weights
                pl.BlockSpec((1, Cp), lambda m, k: (0, 0)),        # conv bias
            ],
            out_specs=[
                pl.BlockSpec((tile_m, Cp), lambda m, k: (m, 0)),   # conv out
                pl.BlockSpec((1, 8, Cp), lambda m, k: (m, 0, 0)),  # stats
            ],
        ),
        compiler_params=pltpu.CompilerParams(
            dimension_semantics=("parallel", "arbitrary"),
            vmem_limit_bytes=vmem_limit),
        cost_estimate=pl.CostEstimate(
            flops=2 * Mp * Kp * Cp,
            transcendentals=0,
            bytes_accessed=int(Mp * Kp * 2 + n_m * Kp * Cp * 2
                               + Mp * Cp * 4 + n_m * 8 * Cp * 4)),
    )(patches_p, w_p, b_p)

    # --- tiny cross-tile BN-stat combine (Cp-sized, plain XLA) ---------------
    inv_n = 1.0 / float(M)
    mean = stats[:, 0, :].sum(axis=0) * inv_n                  # (Cp,)
    var = stats[:, 1, :].sum(axis=0) * inv_n - mean * mean     # biased var
    var = jnp.maximum(var, 0.0)
    scale = (g_p * jax.lax.rsqrt(var + eps)).reshape(1, Cp)
    shift = (be_p - mean * scale[0]).reshape(1, Cp)

    out = pl.pallas_call(
        _bn_relu_kernel,
        out_shape=jax.ShapeDtypeStruct((Mp, Cp), x.dtype),
        grid_spec=pltpu.PrefetchScalarGridSpec(
            num_scalar_prefetch=0,
            grid=(n_m,),
            in_specs=[
                pl.BlockSpec((tile_m, Cp), lambda m: (m, 0)),
                pl.BlockSpec((1, Cp), lambda m: (0, 0)),
                pl.BlockSpec((1, Cp), lambda m: (0, 0)),
            ],
            out_specs=pl.BlockSpec((tile_m, Cp), lambda m: (m, 0)),
        ),
        compiler_params=pltpu.CompilerParams(
            dimension_semantics=("parallel",),
            vmem_limit_bytes=vmem_limit),
        cost_estimate=pl.CostEstimate(
            flops=2 * Mp * Cp,
            transcendentals=0,
            bytes_accessed=int(Mp * Cp * 4 + Mp * Cp * x.dtype.itemsize
                               + 2 * Cp * 4)),
    )(y_conv, scale, shift)

    y = out[:M, :Cout].reshape(N, Ho, Wo, Cout)                # NHWC
    # TODO(synk): return NHWC and let the consumer handle layout to save this
    # transpose pass; kept NCHW to match the PyTorch module's convention.
    return jnp.transpose(y, (0, 3, 1, 2))


conv_bn_relu_jit = jax.jit(
    conv_bn_relu,
    static_argnames=("stride", "padding", "eps", "max_tile_m"))


def _reference(x, weight, bias, gamma, beta, *, stride, padding, eps):
    """Pure-JAX reference: Conv2d -> BatchNorm2d(training, biased var) -> ReLU."""
    y = jax.lax.conv_general_dilated(
        x, weight, window_strides=(stride, stride),
        padding=((padding, padding), (padding, padding)),
        dimension_numbers=("NCHW", "OIHW", "NCHW"))
    y = y + bias[None, :, None, None]
    mean = y.mean(axis=(0, 2, 3), keepdims=True)
    var = y.var(axis=(0, 2, 3), keepdims=True)
    y = (y - mean) * jax.lax.rsqrt(var + eps)
    y = y * gamma[None, :, None, None] + beta[None, :, None, None]
    return jnp.maximum(y, 0.0)


if __name__ == "__main__":
    def run_case(N, Cin, H, W, Cout, ksize, stride, padding, max_tile_m, key):
        kx, kw, kb, kg, kbe = jax.random.split(key, 5)
        x = jax.random.normal(kx, (N, Cin, H, W), dtype=jnp.float32)
        fan_in = Cin * ksize * ksize
        bound = 1.0 / (fan_in ** 0.5)
        weight = jax.random.uniform(kw, (Cout, Cin, ksize, ksize),
                                    minval=-bound, maxval=bound,
                                    dtype=jnp.float32)
        bias = jax.random.uniform(kb, (Cout,), minval=-bound, maxval=bound,
                                  dtype=jnp.float32)
        gamma = jax.random.uniform(kg, (Cout,), minval=0.5, maxval=1.5,
                                   dtype=jnp.float32)
        beta = 0.1 * jax.random.normal(kbe, (Cout,), dtype=jnp.float32)

        y = conv_bn_relu_jit(x, weight, bias, gamma, beta, stride=stride,
                             padding=padding, eps=1e-3, max_tile_m=max_tile_m)
        y = jax.block_until_ready(y)

        y_ref = _reference(x, weight, bias, gamma, beta,
                           stride=stride, padding=padding, eps=1e-3)
        assert y.shape == y_ref.shape, (y.shape, y_ref.shape)
        # bf16 MXU operands with f32 accumulation: loose-but-tight tolerance.
        err = float(jnp.max(jnp.abs(y - y_ref)))
        assert err < 5e-2, f"max abs error {err}"
        return err

    key = jax.random.PRNGKey(0)
    k1, k2 = jax.random.split(key)

    # Case 1: small shapes consistent with the module (single M/K tile path).
    run_case(N=2, Cin=4, H=16, W=16, Cout=8, ksize=3, stride=1, padding=1,
             max_tile_m=1024, key=k1)
    # Case 2: exercises multi-K accumulation, multiple M tiles and row mask.
    run_case(N=2, Cin=64, H=13, W=13, Cout=16, ksize=3, stride=1, padding=0,
             max_tile_m=128, key=k2)

    print("KERNEL_OK")
</pallas_src>

<mosaic_0001>
module attributes {stable_mosaic.version = 11 : i64} {
  func.func @_conv_stats_kernel(%arg0: i32, %arg1: i32, %arg2: memref<512x128xbf16, #tpu.memory_space<vmem>>, %arg3: memref<128x128xbf16, #tpu.memory_space<vmem>>, %arg4: memref<1x128xf32, #tpu.memory_space<vmem>>, %arg5: memref<512x128xf32, #tpu.memory_space<vmem>>, %arg6: memref<1x8x128xf32, #tpu.memory_space<vmem>>) attributes {dimension_semantics = [#tpu.dimension_semantics<parallel>, #tpu.dimension_semantics<arbitrary>], iteration_bounds = array<i64: 1, 1>, scalar_prefetch = 0 : i64, scratch_operands = 0 : i64, tpu.core_type = #tpu.core_type<tc>, window_params = [{transform_indices = @transform_0, window_bounds = array<i64: 512, 128>}, {transform_indices = @transform_1, window_bounds = array<i64: 128, 128>}, {pipeline_mode = #tpu.pipeline_mode<synchronous>, transform_indices = @transform_2, window_bounds = array<i64: 1, 128>}, {transform_indices = @transform_3, window_bounds = array<i64: 512, 128>}, {transform_indices = @transform_4, window_bounds = array<i64: 1, 8, 128>}]} {
    %c0_i32 = arith.constant 0 : i32
    %0 = arith.cmpi eq, %arg1, %c0_i32 : i32
    %1 = arith.extui %0 : i1 to i32
    %c0_i32_0 = arith.constant 0 : i32
    %2 = arith.cmpi ne, %1, %c0_i32_0 : i32
    scf.if %2 {
      %cst_10 = arith.constant 0.000000e+00 : f32
      %12 = vector.broadcast %cst_10 : f32 to vector<512x128xf32>
      %c0_11 = arith.constant 0 : index
      %c0_12 = arith.constant 0 : index
      %13 = vector.load %arg5[%c0_11, %c0_12] : memref<512x128xf32, #tpu.memory_space<vmem>>, vector<512x128xf32>
      tpu.vector_store %arg5[%c0_11, %c0_12], %12 {strides = array<i32>} : memref<512x128xf32, #tpu.memory_space<vmem>>, vector<512x128xf32>,
    } else {
    }
    %c0 = arith.constant 0 : index
    %c0_1 = arith.constant 0 : index
    %3 = vector.load %arg5[%c0, %c0_1] : memref<512x128xf32, #tpu.memory_space<vmem>>, vector<512x128xf32>
    %c0_2 = arith.constant 0 : index
    %c0_3 = arith.constant 0 : index
    %4 = vector.load %arg2[%c0_2, %c0_3] : memref<512x128xbf16, #tpu.memory_space<vmem>>, vector<512x128xbf16>
    %c0_4 = arith.constant 0 : index
    %c0_5 = arith.constant 0 : index
    %5 = vector.load %arg3[%c0_4, %c0_5] : memref<128x128xbf16, #tpu.memory_space<vmem>>, vector<128x128xbf16>
    %cst = arith.constant dense<0.000000e+00> : vector<512x128xf32>
    %6 = tpu.matmul %4, %5, %cst {dimension_numbers = #tpu.dot_dimension_numbers<[1], [0], [0], [1], [0, 0, 1, 1], [], []>} : vector<512x128xbf16>, vector<128x128xbf16>, vector<512x128xf32> -> vector<512x128xf32>
    %7 = arith.addf %3, %6 : vector<512x128xf32>
    %c0_6 = arith.constant 0 : index
    %c0_7 = arith.constant 0 : index
    %8 = vector.load %arg5[%c0_6, %c0_7] : memref<512x128xf32, #tpu.memory_space<vmem>>, vector<512x128xf32>
    tpu.vector_store %arg5[%c0_6, %c0_7], %7 {strides = array<i32>} : memref<512x128xf32, #tpu.memory_space<vmem>>, vector<512x128xf32>,
    %c0_i32_8 = arith.constant 0 : i32
    %9 = arith.cmpi eq, %arg1, %c0_i32_8 : i32
    %10 = arith.extui %9 : i1 to i32
    %c0_i32_9 = arith.constant 0 : i32
    %11 = arith.cmpi ne, %10, %c0_i32_9 : i32
    scf.if %11 {
      %c0_10 = arith.constant 0 : index
      %c0_11 = arith.constant 0 : index
      %12 = vector.load %arg5[%c0_10, %c0_11] : memref<512x128xf32, #tpu.memory_space<vmem>>, vector<512x128xf32>
      %c0_12 = arith.constant 0 : index
      %c0_13 = arith.constant 0 : index
      %13 = vector.load %arg4[%c0_12, %c0_13] : memref<1x128xf32, #tpu.memory_space<vmem>>, vector<1x128xf32>
      %14 = vector.broadcast %13 : vector<1x128xf32> to vector<512x128xf32>
      %15 = arith.addf %12, %14 : vector<512x128xf32>
      %c0_14 = arith.constant 0 : index
      %c0_15 = arith.constant 0 : index
      %16 = vector.load %arg5[%c0_14, %c0_15] : memref<512x128xf32, #tpu.memory_space<vmem>>, vector<512x128xf32>
      tpu.vector_store %arg5[%c0_14, %c0_15], %15 {strides = array<i32>} : memref<512x128xf32, #tpu.memory_space<vmem>>, vector<512x128xf32>,
      %cst_16 = arith.constant dense<0.000000e+00> : vector<128xf32>
      %17 = vector.multi_reduction <add>, %15, %cst_16 [0] : vector<512x128xf32> to vector<128xf32>
      %18 = vector.shape_cast %17 : vector<128xf32> to vector<1x128xf32>
      %19 = arith.mulf %15, %15 : vector<512x128xf32>
      %cst_17 = arith.constant dense<0.000000e+00> : vector<128xf32>
      %20 = vector.multi_reduction <add>, %19, %cst_17 [0] : vector<512x128xf32> to vector<128xf32>
      %21 = vector.shape_cast %20 : vector<128xf32> to vector<1x128xf32>
      %22 = tpu.iota {dimensions = array<i32: 0>} : vector<8x128xi32>
      %c0_i32_18 = arith.constant 0 : i32
      %23 = vector.broadcast %c0_i32_18 : i32 to vector<8x128xi32>
      %24 = arith.cmpi eq, %22, %23 : vector<8x128xi32>
      %c1_i32 = arith.constant 1 : i32
      %25 = vector.broadcast %c1_i32 : i32 to vector<8x128xi32>
      %26 = arith.cmpi eq, %22, %25 : vector<8x128xi32>
      %cst_19 = arith.constant 0.000000e+00 : f32
      %27 = vector.shape_cast %21 : vector<1x128xf32> to vector<1x128xf32>
      %28 = vector.broadcast %27 : vector<1x128xf32> to vector<8x128xf32>
      %29 = vector.broadcast %cst_19 : f32 to vector<8x128xf32>
      %30 = arith.select %26, %28, %29 : vector<8x128xi1>, vector<8x128xf32>
      %31 = vector.shape_cast %18 : vector<1x128xf32> to vector<1x128xf32>
      %32 = vector.broadcast %31 : vector<1x128xf32> to vector<8x128xf32>
      %33 = arith.select %24, %32, %30 : vector<8x128xi1>, vector<8x128xf32>
      %34 = vector.shape_cast %33 : vector<8x128xf32> to vector<1x8x128xf32>
      %c0_20 = arith.constant 0 : index
      %c0_21 = arith.constant 0 : index
      %c0_22 = arith.constant 0 : index
      %35 = vector.load %arg6[%c0_20, %c0_21, %c0_22] : memref<1x8x128xf32, #tpu.memory_space<vmem>>, vector<1x8x128xf32>
      tpu.vector_store %arg6[%c0_20, %c0_21, %c0_22], %34 {strides = array<i32>} : memref<1x8x128xf32, #tpu.memory_space<vmem>>, vector<1x8x128xf32>,
    } else {
    }
    return
  }
  func.func @transform_0(%arg0: i32, %arg1: i32) -> (i32, i32) {
    %c0_i32 = arith.constant 0 : i32
    return %arg0, %arg1 : i32, i32
  }
  func.func @transform_1(%arg0: i32, %arg1: i32) -> (i32, i32) {
    %c0_i32 = arith.constant 0 : i32
    %c0_i32_0 = arith.constant 0 : i32
    return %arg1, %c0_i32 : i32, i32
  }
  func.func @transform_2(%arg0: i32, %arg1: i32) -> (i32, i32) {
    %c0_i32 = arith.constant 0 : i32
    %c0_i32_0 = arith.constant 0 : i32
    %c0_i32_1 = arith.constant 0 : i32
    return %c0_i32, %c0_i32_0 : i32, i32
  }
  func.func @transform_3(%arg0: i32, %arg1: i32) -> (i32, i32) {
    %c0_i32 = arith.constant 0 : i32
    %c0_i32_0 = arith.constant 0 : i32
    return %arg0, %c0_i32 : i32, i32
  }
  func.func @transform_4(%arg0: i32, %arg1: i32) -> (i32, i32, i32) {
    %c0_i32 = arith.constant 0 : i32
    %c0_i32_0 = arith.constant 0 : i32
    %c0_i32_1 = arith.constant 0 : i32
    return %arg0, %c0_i32, %c0_i32_0 : i32, i32, i32
  }
}

module attributes {stable_mosaic.version = 11 : i64} {
  func.func @_bn_relu_kernel(%arg0: i32, %arg1: memref<512x128xf32, #tpu.memory_space<vmem>>, %arg2: memref<1x128xf32, #tpu.memory_space<vmem>>, %arg3: memref<1x128xf32, #tpu.memory_space<vmem>>, %arg4: memref<512x128xf32, #tpu.memory_space<vmem>>) attributes {dimension_semantics = [#tpu.dimension_semantics<parallel>], iteration_bounds = array<i64: 1>, scalar_prefetch = 0 : i64, scratch_operands = 0 : i64, tpu.core_type = #tpu.core_type<tc>, window_params = [{transform_indices = @transform_0, window_bounds = array<i64: 512, 128>}, {pipeline_mode = #tpu.pipeline_mode<synchronous>, transform_indices = @transform_1, window_bounds = array<i64: 1, 128>}, {pipeline_mode = #tpu.pipeline_mode<synchronous>, transform_indices = @transform_2, window_bounds = array<i64: 1, 128>}, {transform_indices = @transform_3, window_bounds = array<i64: 512, 128>}]} {
    %c0 = arith.constant 0 : index
    %c0_0 = arith.constant 0 : index
    %0 = vector.load %arg1[%c0, %c0_0] : memref<512x128xf32, #tpu.memory_space<vmem>>, vector<512x128xf32>
    %c0_1 = arith.constant 0 : index
    %c0_2 = arith.constant 0 : index
    %1 = vector.load %arg2[%c0_1, %c0_2] : memref<1x128xf32, #tpu.memory_space<vmem>>, vector<1x128xf32>
    %2 = vector.broadcast %1 : vector<1x128xf32> to vector<512x128xf32>
    %3 = arith.mulf %0, %2 : vector<512x128xf32>
    %c0_3 = arith.constant 0 : index
    %c0_4 = arith.constant 0 : index
    %4 = vector.load %arg3[%c0_3, %c0_4] : memref<1x128xf32, #tpu.memory_space<vmem>>, vector<1x128xf32>
    %5 = vector.broadcast %4 : vector<1x128xf32> to vector<512x128xf32>
    %6 = arith.addf %3, %5 : vector<512x128xf32>
    %cst = arith.constant 0.000000e+00 : f32
    %7 = vector.broadcast %cst : f32 to vector<512x128xf32>
    %8 = arith.maximumf %6, %7 : vector<512x128xf32>
    %c0_5 = arith.constant 0 : index
    %c0_6 = arith.constant 0 : index
    %9 = vector.load %arg4[%c0_5, %c0_6] : memref<512x128xf32, #tpu.memory_space<vmem>>, vector<512x128xf32>
    tpu.vector_store %arg4[%c0_5, %c0_6], %8 {strides = array<i32>} : memref<512x128xf32, #tpu.memory_space<vmem>>, vector<512x128xf32>,
    return
  }
  func.func @transform_0(%arg0: i32) -> (i32, i32) {
    %c0_i32 = arith.constant 0 : i32
    %c0_i32_0 = arith.constant 0 : i32
    return %arg0, %c0_i32 : i32, i32
  }
  func.func @transform_1(%arg0: i32) -> (i32, i32) {
    %c0_i32 = arith.constant 0 : i32
    %c0_i32_0 = arith.constant 0 : i32
    %c0_i32_1 = arith.constant 0 : i32
    return %c0_i32, %c0_i32_0 : i32, i32
  }
  func.func @transform_2(%arg0: i32) -> (i32, i32) {
    %c0_i32 = arith.constant 0 : i32
    %c0_i32_0 = arith.constant 0 : i32
    %c0_i32_1 = arith.constant 0 : i32
    return %c0_i32, %c0_i32_0 : i32, i32
  }
  func.func @transform_3(%arg0: i32) -> (i32, i32) {
    %c0_i32 = arith.constant 0 : i32
    %c0_i32_0 = arith.constant 0 : i32
    return %arg0, %c0_i32 : i32, i32
  }
}

</mosaic_0001>

<bundles_post_ra>
// kernel: conv_bn_relu.3
= control target key start
LH: loop header
LB: loop body
LE: loop exit
PB: predicated region body
PF: predicated region fallthrough
CT: control target
= control target key end

     0   :  { %s896_s0 = inlined_call_operand.vmem [shape: f32[512,128], index: 0, kind: input, shape index: {}]   ;;  %s897_s1 = inlined_call_operand.vmem [shape: f32[1,128], index: 1, kind: input, shape index: {}]   ;;  %s898_s2 = inlined_call_operand.vmem [shape: f32[1,128], index: 2, kind: input, shape index: {}]   ;;  %s899_s3 = inlined_call_operand.vmem [shape: f32[512,128], index: 3, kind: output, shape index: {}]  }
   0x1   :  { %v14_v0 = vld [vmem:[%s896_s0] sm:$0xff]  ;;  %v15_v4 = vld [vmem:[%s896_s0 + $0x8] sm:$0xff]  ;;  %v16_v5 = vld [vmem:[%s896_s0 + $0x10] sm:$0xff] }
   0x2   :  { %v380_v1 = vld [vmem:[%s897_s1] ss:$0 sm:$0xff]  ;;  %v17_v6 = vld [vmem:[%s896_s0 + $0x18] sm:$0xff]  ;;  %v19_v11 = vld [vmem:[%s896_s0 + $0x28] sm:$0xff] }
   0x3   :  { %v385_v2 = vld [vmem:[%s898_s2] ss:$0 sm:$0xff]  ;;  %v85_v3 = vmul.f32 %v380_v1, %v14_v0  ;;  %v86_v7 = vmul.f32 %v380_v1, %v15_v4  ;;  %v87_v8 = vmul.f32 %v380_v1, %v16_v5  ;;  %v88_v9 = vmul.f32 %v380_v1, %v17_v6  ;;  %v20_v12 = vld [vmem:[%s896_s0 + $0x30] sm:$0xff]  ;;  %v21_v17 = vld [vmem:[%s896_s0 + $0x38] sm:$0xff] }
   0x4   :  { %v18_v10 = vld [vmem:[%s896_s0 + $0x20] sm:$0xff]  ;;  %v90_v15 = vmul.f32 %v380_v1, %v19_v11  ;;  %v91_v16 = vmul.f32 %v380_v1, %v20_v12  ;;  %v92_v21 = vmul.f32 %v380_v1, %v21_v17  ;;  %v23_v27 = vld [vmem:[%s896_s0 + $0x48] sm:$0xff]  ;;  %v24_v28 = vld [vmem:[%s896_s0 + $0x50] sm:$0xff] }
   0x5   :  { %v156_v13 = vadd.f32 %v385_v2, %v85_v3  ;;  %v89_v14 = vmul.f32 %v380_v1, %v18_v10  ;;  %v157_v18 = vadd.f32 %v385_v2, %v86_v7  ;;  %v158_v19 = vadd.f32 %v385_v2, %v87_v8  ;;  %v22_v22 = vld [vmem:[%s896_s0 + $0x40] sm:$0xff]  ;;  %v25_v29 = vld [vmem:[%s896_s0 + $0x58] sm:$0xff]  ;;  %v27_v35 = vld [vmem:[%s896_s0 + $0x68] sm:$0xff] }
   0x6   :  { %v159_v20 = vadd.f32 %v385_v2, %v88_v9  ;;  %v161_v25 = vadd.f32 %v385_v2, %v90_v15  ;;  %v162_v26 = vadd.f32 %v385_v2, %v91_v16  ;;  %v163_v33 = vadd.f32 %v385_v2, %v92_v21  ;;  %v26_v34 = vld [vmem:[%s896_s0 + $0x60] sm:$0xff]  ;;  %v28_v36 = vld [vmem:[%s896_s0 + $0x70] sm:$0xff]  ;;  %v29_v41 = vld [vmem:[%s896_s0 + $0x78] sm:$0xff] }
   0x7   :  { %v220_v23 = vmax.f32 %v156_v13, 0.0  ;;  %v160_v24 = vadd.f32 %v385_v2, %v89_v14  ;;  %v221_v30 = vmax.f32 %v157_v18, 0.0  ;;  %v222_v31 = vmax.f32 %v158_v19, 0.0  ;;  %v30_v54 = vld [vmem:[%s896_s0 + $0x80] sm:$0xff]  ;;  %v31_v59 = vld [vmem:[%s896_s0 + $0x88] sm:$0xff]  ;;  %v32_v60 = vld [vmem:[%s896_s0 + $0x90] sm:$0xff] }
   0x8   :  { %v223_v32 = vmax.f32 %v159_v20, 0.0  ;;  %v225_v38 = vmax.f32 %v161_v25, 0.0  ;;  %v226_v39 = vmax.f32 %v162_v26, 0.0  ;;  %v93_v40 = vmul.f32 %v380_v1, %v22_v22  ;;  %v33_v61 = vld [vmem:[%s896_s0 + $0x98] sm:$0xff]  ;;  %v34_v4 = vld [vmem:[%s896_s0 + $0xa0] sm:$0xff]  ;;  %v35_v5 = vld [vmem:[%s896_s0 + $0xa8] sm:$0xff] }
   0x9   :  { %284 = vst [vmem:[%s899_s3] sm:$0xff] %v220_v23  ;;  %v224_v37 = vmax.f32 %v160_v24, 0.0  ;;  %285 = vst [vmem:[%s899_s3 + $0x8] sm:$0xff] %v221_v30  ;;  %v227_v42 = vmax.f32 %v163_v33, 0.0  ;;  %v94_v43 = vmul.f32 %v380_v1, %v23_v27  ;;  %v95_v44 = vmul.f32 %v380_v1, %v24_v28  ;;  %v36_v6 = vld [vmem:[%s896_s0 + $0xb0] sm:$0xff]  ;;  %v37_v11 = vld [vmem:[%s896_s0 + $0xb8] sm:$0xff] }
   0xa   :  { %286 = vst [vmem:[%s899_s3 + $0x10] sm:$0xff] %v222_v31  ;;  %287 = vst [vmem:[%s899_s3 + $0x18] sm:$0xff] %v223_v32  ;;  %v96_v45 = vmul.f32 %v380_v1, %v25_v29  ;;  %v164_v46 = vadd.f32 %v385_v2, %v93_v40  ;;  %v97_v47 = vmul.f32 %v380_v1, %v26_v34  ;;  %v38_v24 = vld [vmem:[%s896_s0 + $0xc0] sm:$0xff]  ;;  %v39_v29 = vld [vmem:[%s896_s0 + $0xc8] sm:$0xff] }
   0xb   :  { %288 = vst [vmem:[%s899_s3 + $0x20] sm:$0xff] %v224_v37  ;;  %289 = vst [vmem:[%s899_s3 + $0x28] sm:$0xff] %v225_v38  ;;  %v98_v48 = vmul.f32 %v380_v1, %v27_v35  ;;  %v99_v49 = vmul.f32 %v380_v1, %v28_v36  ;;  %v165_v50 = vadd.f32 %v385_v2, %v94_v43  ;;  %v40_v30 = vld [vmem:[%s896_s0 + $0xd0] sm:$0xff]  ;;  %v41_v31 = vld [vmem:[%s896_s0 + $0xd8] sm:$0xff] }
   0xc   :  { %290 = vst [vmem:[%s899_s3 + $0x30] sm:$0xff] %v226_v39  ;;  %291 = vst [vmem:[%s899_s3 + $0x38] sm:$0xff] %v227_v42  ;;  %v166_v51 = vadd.f32 %v385_v2, %v95_v44  ;;  %v167_v52 = vadd.f32 %v385_v2, %v96_v45  ;;  %v100_v53 = vmul.f32 %v380_v1, %v29_v41  ;;  %v228_v55 = vmax.f32 %v164_v46, 0.0  ;;  %v42_v36 = vld [vmem:[%s896_s0 + $0xe0] sm:$0xff]  ;;  %v43_v37 = vld [vmem:[%s896_s0 + $0xe8] sm:$0xff] }
   0xd   :  { %v168_v56 = vadd.f32 %v385_v2, %v97_v47  ;;  %v169_v57 = vadd.f32 %v385_v2, %v98_v48  ;;  %v170_v58 = vadd.f32 %v385_v2, %v99_v49  ;;  %v229_v62 = vmax.f32 %v165_v50, 0.0  ;;  %v44_v38 = vld [vmem:[%s896_s0 + $0xf0] sm:$0xff]  ;;  %v45_v43 = vld [vmem:[%s896_s0 + $0xf8] sm:$0xff] }
   0xe   :  { %v230_v63 = vmax.f32 %v166_v51, 0.0  ;;  %v231_v0 = vmax.f32 %v167_v52, 0.0  ;;  %v171_v3 = vadd.f32 %v385_v2, %v100_v53  ;;  %292 = vst [vmem:[%s899_s3 + $0x40] sm:$0xff] %v228_v55  ;;  %v101_v10 = vmul.f32 %v380_v1, %v30_v54 }
   0xf   :  { %v232_v7 = vmax.f32 %v168_v56, 0.0  ;;  %v233_v8 = vmax.f32 %v169_v57, 0.0  ;;  %v234_v9 = vmax.f32 %v170_v58, 0.0  ;;  %293 = vst [vmem:[%s899_s3 + $0x48] sm:$0xff] %v229_v62  ;;  %v102_v13 = vmul.f32 %v380_v1, %v31_v59  ;;  %v46_v56 = vld [vmem:[%s896_s0 + $0x100] sm:$0xff]  ;;  %v48_v62 = vld [vmem:[%s896_s0 + $0x110] sm:$0xff] }
  0x10   :  { %294 = vst [vmem:[%s899_s3 + $0x50] sm:$0xff] %v230_v63  ;;  %295 = vst [vmem:[%s899_s3 + $0x58] sm:$0xff] %v231_v0  ;;  %v235_v12 = vmax.f32 %v171_v3, 0.0  ;;  %v103_v14 = vmul.f32 %v380_v1, %v32_v60  ;;  %v104_v15 = vmul.f32 %v380_v1, %v33_v61  ;;  %v172_v16 = vadd.f32 %v385_v2, %v101_v10  ;;  %v47_v61 = vld [vmem:[%s896_s0 + $0x108] sm:$0xff]  ;;  %v49_v63 = vld [vmem:[%s896_s0 + $0x118] sm:$0xff] }
  0x11   :  { %296 = vst [vmem:[%s899_s3 + $0x60] sm:$0xff] %v232_v7  ;;  %297 = vst [vmem:[%s899_s3 + $0x68] sm:$0xff] %v233_v8  ;;  %v105_v17 = vmul.f32 %v380_v1, %v34_v4  ;;  %v106_v18 = vmul.f32 %v380_v1, %v35_v5  ;;  %v107_v19 = vmul.f32 %v380_v1, %v36_v6  ;;  %v50_v6 = vld [vmem:[%s896_s0 + $0x120] sm:$0xff]  ;;  %v51_v7 = vld [vmem:[%s896_s0 + $0x128] sm:$0xff] }
  0x12   :  { %298 = vst [vmem:[%s899_s3 + $0x70] sm:$0xff] %v234_v9  ;;  %299 = vst [vmem:[%s899_s3 + $0x78] sm:$0xff] %v235_v12  ;;  %v173_v20 = vadd.f32 %v385_v2, %v102_v13  ;;  %v174_v21 = vadd.f32 %v385_v2, %v103_v14  ;;  %v175_v22 = vadd.f32 %v385_v2, %v104_v15  ;;  %v236_v25 = vmax.f32 %v172_v16, 0.0  ;;  %v52_v8 = vld [vmem:[%s896_s0 + $0x130] sm:$0xff]  ;;  %v53_v13 = vld [vmem:[%s896_s0 + $0x138] sm:$0xff] }
  0x13   :  { %v108_v23 = vmul.f32 %v380_v1, %v37_v11  ;;  %v176_v26 = vadd.f32 %v385_v2, %v105_v17  ;;  %v177_v27 = vadd.f32 %v385_v2, %v106_v18  ;;  %v178_v28 = vadd.f32 %v385_v2, %v107_v19 }
  0x14   :  { %v237_v32 = vmax.f32 %v173_v20, 0.0  ;;  %v238_v33 = vmax.f32 %v174_v21, 0.0  ;;  %v239_v34 = vmax.f32 %v175_v22, 0.0  ;;  %300 = vst [vmem:[%s899_s3 + $0x80] sm:$0xff] %v236_v25  ;;  %v109_v42 = vmul.f32 %v380_v1, %v38_v24 }
  0x15   :  { %v179_v35 = vadd.f32 %v385_v2, %v108_v23  ;;  %v240_v39 = vmax.f32 %v176_v26, 0.0  ;;  %v241_v40 = vmax.f32 %v177_v27, 0.0  ;;  %v242_v41 = vmax.f32 %v178_v28, 0.0  ;;  %v54_v26 = vld [vmem:[%s896_s0 + $0x140] sm:$0xff] }
  0x16   :  { %301 = vst [vmem:[%s899_s3 + $0x88] sm:$0xff] %v237_v32  ;;  %302 = vst [vmem:[%s899_s3 + $0x90] sm:$0xff] %v238_v33  ;;  %v110_v45 = vmul.f32 %v380_v1, %v39_v29  ;;  %v111_v46 = vmul.f32 %v380_v1, %v40_v30  ;;  %v112_v47 = vmul.f32 %v380_v1, %v41_v31  ;;  %v55_v31 = vld [vmem:[%s896_s0 + $0x148] sm:$0xff]  ;;  %v56_v32 = vld [vmem:[%s896_s0 + $0x150] sm:$0xff] }
  0x17   :  { %303 = vst [vmem:[%s899_s3 + $0x98] sm:$0xff] %v239_v34  ;;  %v243_v44 = vmax.f32 %v179_v35, 0.0  ;;  %304 = vst [vmem:[%s899_s3 + $0xa0] sm:$0xff] %v240_v39  ;;  %v180_v48 = vadd.f32 %v385_v2, %v109_v42  ;;  %v113_v49 = vmul.f32 %v380_v1, %v42_v36  ;;  %v114_v50 = vmul.f32 %v380_v1, %v43_v37  ;;  %v57_v33 = vld [vmem:[%s896_s0 + $0x158] sm:$0xff]  ;;  %v59_v39 = vld [vmem:[%s896_s0 + $0x168] sm:$0xff] }
  0x18   :  { %305 = vst [vmem:[%s899_s3 + $0xa8] sm:$0xff] %v241_v40  ;;  %306 = vst [vmem:[%s899_s3 + $0xb0] sm:$0xff] %v242_v41  ;;  %v115_v51 = vmul.f32 %v380_v1, %v44_v38  ;;  %v181_v52 = vadd.f32 %v385_v2, %v110_v45  ;;  %v182_v53 = vadd.f32 %v385_v2, %v111_v46  ;;  %v58_v38 = vld [vmem:[%s896_s0 + $0x160] sm:$0xff]  ;;  %v60_v40 = vld [vmem:[%s896_s0 + $0x170] sm:$0xff] }
  0x19   :  { %307 = vst [vmem:[%s899_s3 + $0xb8] sm:$0xff] %v243_v44  ;;  %v183_v54 = vadd.f32 %v385_v2, %v112_v47  ;;  %v116_v55 = vmul.f32 %v380_v1, %v45_v43  ;;  %v244_v57 = vmax.f32 %v180_v48, 0.0  ;;  %v184_v58 = vadd.f32 %v385_v2, %v113_v49  ;;  %v61_v45 = vld [vmem:[%s896_s0 + $0x178] sm:$0xff] }
  0x1a   :  { %v185_v59 = vadd.f32 %v385_v2, %v114_v50  ;;  %v186_v60 = vadd.f32 %v385_v2, %v115_v51  ;;  %v245_v0 = vmax.f32 %v181_v52, 0.0  ;;  %v246_v3 = vmax.f32 %v182_v53, 0.0 }
  0x1b   :  { %v247_v4 = vmax.f32 %v183_v54, 0.0  ;;  %v187_v5 = vadd.f32 %v385_v2, %v116_v55  ;;  %308 = vst [vmem:[%s899_s3 + $0xc0] sm:$0xff] %v244_v57  ;;  %v248_v9 = vmax.f32 %v184_v58, 0.0  ;;  %v117_v12 = vmul.f32 %v380_v1, %v46_v56  ;;  %v62_v58 = vld [vmem:[%s896_s0 + $0x180] sm:$0xff] }
  0x1c   :  { %v249_v10 = vmax.f32 %v185_v59, 0.0  ;;  %v250_v11 = vmax.f32 %v186_v60, 0.0  ;;  %309 = vst [vmem:[%s899_s3 + $0xc8] sm:$0xff] %v245_v0  ;;  %310 = vst [vmem:[%s899_s3 + $0xd0] sm:$0xff] %v246_v3  ;;  %v118_v15 = vmul.f32 %v380_v1, %v47_v61  ;;  %v119_v16 = vmul.f32 %v380_v1, %v48_v62  ;;  %v64_v0 = vld [vmem:[%s896_s0 + $0x190] sm:$0xff]  ;;  %v65_v3 = vld [vmem:[%s896_s0 + $0x198] sm:$0xff] }
  0x1d   :  { %311 = vst [vmem:[%s899_s3 + $0xd8] sm:$0xff] %v247_v4  ;;  %v251_v14 = vmax.f32 %v187_v5, 0.0  ;;  %v120_v17 = vmul.f32 %v380_v1, %v49_v63  ;;  %312 = vst [vmem:[%s899_s3 + $0xe0] sm:$0xff] %v248_v9  ;;  %v188_v18 = vadd.f32 %v385_v2, %v117_v12  ;;  %v121_v19 = vmul.f32 %v380_v1, %v50_v6  ;;  %v63_v63 = vld [vmem:[%s896_s0 + $0x188] sm:$0xff] }
  0x1e   :  { %313 = vst [vmem:[%s899_s3 + $0xe8] sm:$0xff] %v249_v10  ;;  %314 = vst [vmem:[%s899_s3 + $0xf0] sm:$0xff] %v250_v11  ;;  %v122_v20 = vmul.f32 %v380_v1, %v51_v7  ;;  %v123_v21 = vmul.f32 %v380_v1, %v52_v8  ;;  %v189_v22 = vadd.f32 %v385_v2, %v118_v15  ;;  %v66_v8 = vld [vmem:[%s896_s0 + $0x1a0] sm:$0xff]  ;;  %v67_v9 = vld [vmem:[%s896_s0 + $0x1a8] sm:$0xff] }
  0x1f   :  { %315 = vst [vmem:[%s899_s3 + $0xf8] sm:$0xff] %v251_v14  ;;  %v190_v23 = vadd.f32 %v385_v2, %v119_v16  ;;  %v191_v24 = vadd.f32 %v385_v2, %v120_v17  ;;  %v124_v25 = vmul.f32 %v380_v1, %v53_v13  ;;  %v252_v27 = vmax.f32 %v188_v18, 0.0  ;;  %v68_v10 = vld [vmem:[%s896_s0 + $0x1b0] sm:$0xff]  ;;  %v69_v15 = vld [vmem:[%s896_s0 + $0x1b8] sm:$0xff] }
  0x20   :  { %v192_v28 = vadd.f32 %v385_v2, %v121_v19  ;;  %v193_v29 = vadd.f32 %v385_v2, %v122_v20  ;;  %v194_v30 = vadd.f32 %v385_v2, %v123_v21  ;;  %v253_v34 = vmax.f32 %v189_v22, 0.0 }
  0x21   :  { %v254_v35 = vmax.f32 %v190_v23, 0.0  ;;  %v255_v36 = vmax.f32 %v191_v24, 0.0  ;;  %v195_v37 = vadd.f32 %v385_v2, %v124_v25  ;;  %316 = vst [vmem:[%s899_s3 + $0x100] sm:$0xff] %v252_v27  ;;  %v125_v44 = vmul.f32 %v380_v1, %v54_v26 }
  0x22   :  { %v256_v41 = vmax.f32 %v192_v28, 0.0  ;;  %v257_v42 = vmax.f32 %v193_v29, 0.0  ;;  %v258_v43 = vmax.f32 %v194_v30, 0.0  ;;  %317 = vst [vmem:[%s899_s3 + $0x108] sm:$0xff] %v253_v34  ;;  %v126_v47 = vmul.f32 %v380_v1, %v55_v31  ;;  %v70_v28 = vld [vmem:[%s896_s0 + $0x1c0] sm:$0xff]  ;;  %v72_v34 = vld [vmem:[%s896_s0 + $0x1d0] sm:$0xff] }
  0x23   :  { %318 = vst [vmem:[%s899_s3 + $0x110] sm:$0xff] %v254_v35  ;;  %319 = vst [vmem:[%s899_s3 + $0x118] sm:$0xff] %v255_v36  ;;  %v259_v46 = vmax.f32 %v195_v37, 0.0  ;;  %v127_v48 = vmul.f32 %v380_v1, %v56_v32  ;;  %v128_v49 = vmul.f32 %v380_v1, %v57_v33  ;;  %v196_v50 = vadd.f32 %v385_v2, %v125_v44  ;;  %v71_v33 = vld [vmem:[%s896_s0 + $0x1c8] sm:$0xff]  ;;  %v73_v35 = vld [vmem:[%s896_s0 + $0x1d8] sm:$0xff] }
  0x24   :  { %320 = vst [vmem:[%s899_s3 + $0x120] sm:$0xff] %v256_v41  ;;  %321 = vst [vmem:[%s899_s3 + $0x128] sm:$0xff] %v257_v42  ;;  %v129_v51 = vmul.f32 %v380_v1, %v58_v38  ;;  %v130_v52 = vmul.f32 %v380_v1, %v59_v39  ;;  %v131_v53 = vmul.f32 %v380_v1, %v60_v40  ;;  %v74_v40 = vld [vmem:[%s896_s0 + $0x1e0] sm:$0xff]  ;;  %v75_v41 = vld [vmem:[%s896_s0 + $0x1e8] sm:$0xff] }
  0x25   :  { %322 = vst [vmem:[%s899_s3 + $0x130] sm:$0xff] %v258_v43  ;;  %323 = vst [vmem:[%s899_s3 + $0x138] sm:$0xff] %v259_v46  ;;  %v197_v54 = vadd.f32 %v385_v2, %v126_v47  ;;  %v198_v55 = vadd.f32 %v385_v2, %v127_v48  ;;  %v199_v56 = vadd.f32 %v385_v2, %v128_v49  ;;  %v260_v59 = vmax.f32 %v196_v50, 0.0  ;;  %v76_v42 = vld [vmem:[%s896_s0 + $0x1f0] sm:$0xff]  ;;  %v77_v47 = vld [vmem:[%s896_s0 + $0x1f8] sm:$0xff] }
  0x26   :  { %v132_v57 = vmul.f32 %v380_v1, %v61_v45  ;;  %v200_v60 = vadd.f32 %v385_v2, %v129_v51  ;;  %v201_v61 = vadd.f32 %v385_v2, %v130_v52  ;;  %v202_v62 = vadd.f32 %v385_v2, %v131_v53 }
  0x27   :  { %v261_v4 = vmax.f32 %v197_v54, 0.0  ;;  %v262_v5 = vmax.f32 %v198_v55, 0.0  ;;  %v263_v6 = vmax.f32 %v199_v56, 0.0  ;;  %324 = vst [vmem:[%s899_s3 + $0x140] sm:$0xff] %v260_v59  ;;  %v133_v14 = vmul.f32 %v380_v1, %v62_v58 }
  0x28   :  { %v203_v7 = vadd.f32 %v385_v2, %v132_v57  ;;  %v264_v11 = vmax.f32 %v200_v60, 0.0  ;;  %v265_v12 = vmax.f32 %v201_v61, 0.0  ;;  %v266_v13 = vmax.f32 %v202_v62, 0.0 }
  0x29   :  { %325 = vst [vmem:[%s899_s3 + $0x148] sm:$0xff] %v261_v4  ;;  %326 = vst [vmem:[%s899_s3 + $0x150] sm:$0xff] %v262_v5  ;;  %v134_v17 = vmul.f32 %v380_v1, %v63_v63  ;;  %v135_v18 = vmul.f32 %v380_v1, %v64_v0  ;;  %v136_v19 = vmul.f32 %v380_v1, %v65_v3 }
  0x2a   :  { %327 = vst [vmem:[%s899_s3 + $0x158] sm:$0xff] %v263_v6  ;;  %v267_v16 = vmax.f32 %v203_v7, 0.0  ;;  %328 = vst [vmem:[%s899_s3 + $0x160] sm:$0xff] %v264_v11  ;;  %v204_v20 = vadd.f32 %v385_v2, %v133_v14  ;;  %v137_v21 = vmul.f32 %v380_v1, %v66_v8  ;;  %v138_v22 = vmul.f32 %v380_v1, %v67_v9 }
  0x2b   :  { %329 = vst [vmem:[%s899_s3 + $0x168] sm:$0xff] %v265_v12  ;;  %330 = vst [vmem:[%s899_s3 + $0x170] sm:$0xff] %v266_v13  ;;  %v139_v23 = vmul.f32 %v380_v1, %v68_v10  ;;  %v205_v24 = vadd.f32 %v385_v2, %v134_v17  ;;  %v206_v25 = vadd.f32 %v385_v2, %v135_v18 }
  0x2c   :  { %331 = vst [vmem:[%s899_s3 + $0x178] sm:$0xff] %v267_v16  ;;  %v207_v26 = vadd.f32 %v385_v2, %v136_v19  ;;  %v140_v27 = vmul.f32 %v380_v1, %v69_v15  ;;  %v268_v29 = vmax.f32 %v204_v20, 0.0  ;;  %v208_v30 = vadd.f32 %v385_v2, %v137_v21 }
  0x2d   :  { %v209_v31 = vadd.f32 %v385_v2, %v138_v22  ;;  %v210_v32 = vadd.f32 %v385_v2, %v139_v23  ;;  %v269_v36 = vmax.f32 %v205_v24, 0.0  ;;  %v270_v37 = vmax.f32 %v206_v25, 0.0 }
  0x2e   :  { %v271_v38 = vmax.f32 %v207_v26, 0.0  ;;  %v211_v39 = vadd.f32 %v385_v2, %v140_v27  ;;  %332 = vst [vmem:[%s899_s3 + $0x180] sm:$0xff] %v268_v29  ;;  %v272_v43 = vmax.f32 %v208_v30, 0.0  ;;  %v141_v46 = vmul.f32 %v380_v1, %v70_v28 }
  0x2f   :  { %v273_v44 = vmax.f32 %v209_v31, 0.0  ;;  %v274_v45 = vmax.f32 %v210_v32, 0.0  ;;  %333 = vst [vmem:[%s899_s3 + $0x188] sm:$0xff] %v269_v36  ;;  %334 = vst [vmem:[%s899_s3 + $0x190] sm:$0xff] %v270_v37  ;;  %v142_v49 = vmul.f32 %v380_v1, %v71_v33  ;;  %v143_v50 = vmul.f32 %v380_v1, %v72_v34 }
  0x30   :  { %335 = vst [vmem:[%s899_s3 + $0x198] sm:$0xff] %v271_v38  ;;  %v275_v48 = vmax.f32 %v211_v39, 0.0  ;;  %v144_v51 = vmul.f32 %v380_v1, %v73_v35  ;;  %336 = vst [vmem:[%s899_s3 + $0x1a0] sm:$0xff] %v272_v43  ;;  %v212_v52 = vadd.f32 %v385_v2, %v141_v46  ;;  %v145_v53 = vmul.f32 %v380_v1, %v74_v40 }
  0x31   :  { %337 = vst [vmem:[%s899_s3 + $0x1a8] sm:$0xff] %v273_v44  ;;  %338 = vst [vmem:[%s899_s3 + $0x1b0] sm:$0xff] %v274_v45  ;;  %v146_v54 = vmul.f32 %v380_v1, %v75_v41  ;;  %v147_v55 = vmul.f32 %v380_v1, %v76_v42  ;;  %v213_v56 = vadd.f32 %v385_v2, %v142_v49 }
  0x32   :  { %339 = vst [vmem:[%s899_s3 + $0x1b8] sm:$0xff] %v275_v48  ;;  %v214_v57 = vadd.f32 %v385_v2, %v143_v50  ;;  %v215_v58 = vadd.f32 %v385_v2, %v144_v51  ;;  %v148_v59 = vmul.f32 %v380_v1, %v77_v47  ;;  %v276_v60 = vmax.f32 %v212_v52, 0.0 }
  0x33   :  { %v216_v61 = vadd.f32 %v385_v2, %v145_v53  ;;  %v217_v62 = vadd.f32 %v385_v2, %v146_v54  ;;  %v218_v63 = vadd.f32 %v385_v2, %v147_v55  ;;  %v277_v0 = vmax.f32 %v213_v56, 0.0 }
  0x34   :  { %v278_v3 = vmax.f32 %v214_v57, 0.0  ;;  %v279_v4 = vmax.f32 %v215_v58, 0.0  ;;  %v219_v5 = vadd.f32 %v385_v2, %v148_v59  ;;  %340 = vst [vmem:[%s899_s3 + $0x1c0] sm:$0xff] %v276_v60 }
  0x35   :  { %v280_v6 = vmax.f32 %v216_v61, 0.0  ;;  %v281_v7 = vmax.f32 %v217_v62, 0.0  ;;  %v282_v8 = vmax.f32 %v218_v63, 0.0  ;;  %341 = vst [vmem:[%s899_s3 + $0x1c8] sm:$0xff] %v277_v0 }
  0x36   :  { %342 = vst [vmem:[%s899_s3 + $0x1d0] sm:$0xff] %v278_v3  ;;  %343 = vst [vmem:[%s899_s3 + $0x1d8] sm:$0xff] %v279_v4  ;;  %v283_v1 = vmax.f32 %v219_v5, 0.0 }
  0x37   :  { %344 = vst [vmem:[%s899_s3 + $0x1e0] sm:$0xff] %v280_v6  ;;  %345 = vst [vmem:[%s899_s3 + $0x1e8] sm:$0xff] %v281_v7 }
  0x38   :  { %346 = vst [vmem:[%s899_s3 + $0x1f0] sm:$0xff] %v282_v8  ;;  %347 = vst [vmem:[%s899_s3 + $0x1f8] sm:$0xff] %v283_v1 }

// kernel: conv_bn_relu.2
= control target key start
LH: loop header
LB: loop body
LE: loop exit
PB: predicated region body
PF: predicated region fallthrough
CT: control target
= control target key end

     0   :  { %s2124_s1 = inlined_call_operand.vmem [shape: bf16[128,128], index: 1, kind: input, shape index: {}]   ;;  %s2125_s0 = inlined_call_operand.vmem [shape: bf16[512,128], index: 0, kind: input, shape index: {}]   ;;  %s2126_s2 = inlined_call_operand.vmem [shape: f32[1,128], index: 2, kind: input, shape index: {}]   ;;  %s2127_s3 = inlined_call_operand.vmem [shape: f32[512,128], index: 3, kind: output, shape index: {0}]   ;;  %s2128_s4 = inlined_call_operand.vmem [shape: f32[1,8,128], index: 4, kind: output, shape index: {1}]  }
   0x1   :  { %v1483_v0 = vld [vmem:[%s2124_s1] sm:$0xff]   ;;  %v1484_v1 = vld [vmem:[%s2124_s1 + $0x8] sm:$0xff]   ;;  %v1485_v2 = vld [vmem:[%s2124_s1 + $0x10] sm:$0xff]  }
   0x2   :  { %1386 = vmatprep.subr.bf16.mxu0 %v1483_v0  ;;  %1466 = vmatprep.subr.bf16.mxu1 %v1483_v0  ;;  %v1486_v3 = vld [vmem:[%s2124_s1 + $0x18] sm:$0xff]   ;;  %v1491_v4 = vld [vmem:[%s2125_s0] sm:$0xff]   ;;  %v1488_v6 = vld [vmem:[%s2124_s1 + $0x28] sm:$0xff]  }
   0x3   :  { %1387 = vmatpush3.bf16.msra.mxu0 %v1483_v0  ;;  %1474 = vmatpush3.bf16.msra.mxu1 %v1483_v0  ;;  %v1487_v5 = vld [vmem:[%s2124_s1 + $0x20] sm:$0xff]   ;;  %v1489_v7 = vld [vmem:[%s2124_s1 + $0x30] sm:$0xff]   ;;  %v1490_v8 = vld [vmem:[%s2124_s1 + $0x38] sm:$0xff]  }
   0x4   :  { %1388 = vmatprep.subr.bf16.mxu0 %v1484_v1  ;;  %1467 = vmatprep.subr.bf16.mxu1 %v1484_v1  ;;  %v1507_v9 = vld [vmem:[%s2125_s0 + $0x80] sm:$0xff]   ;;  %v1492_v10 = vld [vmem:[%s2125_s0 + $0x8] sm:$0xff]   ;;  %v1493_v11 = vld [vmem:[%s2125_s0 + $0x10] sm:$0xff]  }
   0x5   :  { %1402 = vmatprep.mubr.bf16.mxu0 %v1491_v4  ;;  %1434 = vmatprep.mubr.bf16.mxu1 %v1507_v9  ;;  %v1508_v12 = vld [vmem:[%s2125_s0 + $0x88] sm:$0xff]   ;;  %v1509_v13 = vld [vmem:[%s2125_s0 + $0x90] sm:$0xff]   ;;  %v1494_v14 = vld [vmem:[%s2125_s0 + $0x18] sm:$0xff]  }
   0x6   :  { %v1495_v15 = vld [vmem:[%s2125_s0 + $0x20] sm:$0xff]   ;;  %v1510_v16 = vld [vmem:[%s2125_s0 + $0x98] sm:$0xff]   ;;  %v1496_v18 = vld [vmem:[%s2125_s0 + $0x28] sm:$0xff]  }
   0x7   :  { %1389 = vmatpush3.bf16.msra.mxu0 %v1484_v1  ;;  %1475 = vmatpush3.bf16.msra.mxu1 %v1484_v1  ;;  %v1511_v17 = vld [vmem:[%s2125_s0 + $0xa0] sm:$0xff]   ;;  %v1512_v19 = vld [vmem:[%s2125_s0 + $0xa8] sm:$0xff]   ;;  %v1497_v20 = vld [vmem:[%s2125_s0 + $0x30] sm:$0xff]  }
   0x8   :  { %1390 = vmatprep.subr.bf16.mxu0 %v1485_v2  ;;  %1468 = vmatprep.subr.bf16.mxu1 %v1485_v2  ;;  %v1513_v21 = vld [vmem:[%s2125_s0 + $0xb0] sm:$0xff]   ;;  %v1498_v22 = vld [vmem:[%s2125_s0 + $0x38] sm:$0xff]   ;;  %v1499_v24 = vld [vmem:[%s2125_s0 + $0x40] sm:$0xff]  }
   0x9   :  { %v1514_v23 = vld [vmem:[%s2125_s0 + $0xb8] sm:$0xff]   ;;  %v1515_v25 = vld [vmem:[%s2125_s0 + $0xc0] sm:$0xff]   ;;  %v1500_v26 = vld [vmem:[%s2125_s0 + $0x48] sm:$0xff]  }
   0xa   :  { %v1516_v27 = vld [vmem:[%s2125_s0 + $0xc8] sm:$0xff]   ;;  %v1501_v28 = vld [vmem:[%s2125_s0 + $0x50] sm:$0xff]   ;;  %v1502_v30 = vld [vmem:[%s2125_s0 + $0x58] sm:$0xff]  }
   0xb   :  { %1391 = vmatpush3.bf16.msra.mxu0 %v1485_v2  ;;  %1476 = vmatpush3.bf16.msra.mxu1 %v1485_v2  ;;  %v1517_v29 = vld [vmem:[%s2125_s0 + $0xd0] sm:$0xff]   ;;  %v1518_v31 = vld [vmem:[%s2125_s0 + $0xd8] sm:$0xff]   ;;  %v1503_v32 = vld [vmem:[%s2125_s0 + $0x60] sm:$0xff]  }
   0xc   :  { %1392 = vmatprep.subr.bf16.mxu0 %v1486_v3  ;;  %1469 = vmatprep.subr.bf16.mxu1 %v1486_v3  ;;  %v1519_v33 = vld [vmem:[%s2125_s0 + $0xe0] sm:$0xff]   ;;  %v1504_v34 = vld [vmem:[%s2125_s0 + $0x68] sm:$0xff]   ;;  %v1505_v36 = vld [vmem:[%s2125_s0 + $0x70] sm:$0xff]  }
   0xd   :  { %v1520_v35 = vld [vmem:[%s2125_s0 + $0xe8] sm:$0xff]   ;;  %v1521_v37 = vld [vmem:[%s2125_s0 + $0xf0] sm:$0xff]   ;;  %v1506_v38 = vld [vmem:[%s2125_s0 + $0x78] sm:$0xff]  }
   0xe   :  { %v1522_v39 = vld [vmem:[%s2125_s0 + $0xf8] sm:$0xff]   ;;  %v1671_v41 = vld [vmem:[%s2126_s2] ss:$0 sm:$0xff] }
   0xf   :  { %1393 = vmatpush3.bf16.msra.mxu0 %v1486_v3  ;;  %1477 = vmatpush3.bf16.msra.mxu1 %v1486_v3 }
  0x10   :  { %1394 = vmatprep.subr.bf16.mxu0 %v1487_v5  ;;  %1470 = vmatprep.subr.bf16.mxu1 %v1487_v5 }
  0x13   :  { %1395 = vmatpush3.bf16.msra.mxu0 %v1487_v5  ;;  %1478 = vmatpush3.bf16.msra.mxu1 %v1487_v5 }
  0x14   :  { %1396 = vmatprep.subr.bf16.mxu0 %v1488_v6  ;;  %1471 = vmatprep.subr.bf16.mxu1 %v1488_v6 }
  0x17   :  { %1397 = vmatpush3.bf16.msra.mxu0 %v1488_v6  ;;  %1479 = vmatpush3.bf16.msra.mxu1 %v1488_v6 }
  0x18   :  { %1398 = vmatprep.subr.bf16.mxu0 %v1489_v7  ;;  %1472 = vmatprep.subr.bf16.mxu1 %v1489_v7 }
  0x1b   :  { %1399 = vmatpush3.bf16.msra.mxu0 %v1489_v7  ;;  %1480 = vmatpush3.bf16.msra.mxu1 %v1489_v7 }
  0x1c   :  { %1400 = vmatprep.subr.bf16.mxu0 %v1490_v8  ;;  %1473 = vmatprep.subr.bf16.mxu1 %v1490_v8 }
  0x1f   :  { %1401 = vmatpush3.bf16.msra.mxu0 %v1490_v8  ;;  %1481 = vmatpush3.bf16.msra.mxu1 %v1490_v8 }
  0x22   :  { %1403 = vmatmul.mubr.bf16.vlgmr.msra.gmra.mrb[0].mxu0 %v1492_v10  ;;  %1435 = vmatmul.mubr.bf16.vlgmr.msra.gmra.mrb[0].mxu1 %v1508_v12 }
  0x23   :  { %1406 = vmatprep.mubr.bf16.mxu0 %v1493_v11  ;;  %1438 = vmatprep.mubr.bf16.mxu1 %v1509_v13 }
  0x2a   :  { %1407 = vmatmul.mubr.bf16.gmra.mrb[4].mxu0 %v1494_v14  ;;  %1439 = vmatmul.mubr.bf16.gmra.mrb[4].mxu1 %v1510_v16 }
  0x2b   :  { %1410 = vmatprep.mubr.bf16.mxu0 %v1495_v15  ;;  %1442 = vmatprep.mubr.bf16.mxu1 %v1511_v17 }
  0x32   :  { %1411 = vmatmul.mubr.bf16.gmra.mrb[8].mxu0 %v1496_v18  ;;  %1443 = vmatmul.mubr.bf16.gmra.mrb[8].mxu1 %v1512_v19 }
  0x33   :  { %1414 = vmatprep.mubr.bf16.mxu0 %v1497_v20  ;;  %1446 = vmatprep.mubr.bf16.mxu1 %v1513_v21 }
  0x3a   :  { %1415 = vmatmul.mubr.bf16.gmra.mrb[12].mxu0 %v1498_v22  ;;  %1447 = vmatmul.mubr.bf16.gmra.mrb[12].mxu1 %v1514_v23 }
  0x3b   :  { %1418 = vmatprep.mubr.bf16.mxu0 %v1499_v24  ;;  %1450 = vmatprep.mubr.bf16.mxu1 %v1515_v25 }
  0x42   :  { %1419 = vmatmul.mubr.bf16.gmra.mrb[16].mxu0 %v1500_v26  ;;  %1451 = vmatmul.mubr.bf16.gmra.mrb[16].mxu1 %v1516_v27 }
  0x43   :  { %1422 = vmatprep.mubr.bf16.mxu0 %v1501_v28  ;;  %1454 = vmatprep.mubr.bf16.mxu1 %v1517_v29 }
  0x4a   :  { %1423 = vmatmul.mubr.bf16.gmra.mrb[20].mxu0 %v1502_v30  ;;  %1455 = vmatmul.mubr.bf16.gmra.mrb[20].mxu1 %v1518_v31 }
  0x4b   :  { %1426 = vmatprep.mubr.bf16.mxu0 %v1503_v32  ;;  %1458 = vmatprep.mubr.bf16.mxu1 %v1519_v33 }
  0x52   :  { %1427 = vmatmul.mubr.bf16.gmra.mrb[24].mxu0 %v1504_v34  ;;  %1459 = vmatmul.mubr.bf16.gmra.mrb[24].mxu1 %v1520_v35 }
  0x53   :  { %1430 = vmatprep.mubr.bf16.mxu0 %v1505_v36  ;;  %1462 = vmatprep.mubr.bf16.mxu1 %v1521_v37 }
  0x5a   :  { %1431 = vmatmul.mubr.bf16.gmra.mrb[28].mxu0 %v1506_v38  ;;  %1463 = vmatmul.mubr.bf16.gmra.mrb[28].mxu1 %v1522_v39 }
  0xf5   :  { %v1404_v40 = vpop.f32.mrb[0].mxu0  ;;  %v1436_v42 = vpop.f32.mrb[0].mxu1 }
  0xf6   :  { %v503_v43 = vpop.f32.mrb[1].mxu0  ;;  %v631_v44 = vpop.f32.mrb[1].mxu1  ;;  %v962_v47 = vadd.f32 %v1404_v40, %v1671_v41  ;;  %v1675_v49 = vadd.f32 %v1436_v42, %v1671_v41 }
  0xf7   :  { %v1405_v45 = vpop.f32.mrb[2].mxu0  ;;  %v1437_v46 = vpop.f32.mrb[2].mxu1  ;;  %v960_v51 = vadd.f32 %v1671_v41, %v503_v43  ;;  %v1679_v52 = vadd.f32 %v1671_v41, %v631_v44 }
  0xf8   :  { %v506_v48 = vpop.f32.mrb[3].mxu0  ;;  %v634_v50 = vpop.f32.mrb[3].mxu1  ;;  %1026 = vst [vmem:[%s2127_s3 + $0x10] sm:$0xff] %v962_v47  ;;  %v963_v53 = vadd.f32 %v1405_v45, %v1671_v41  ;;  %1058 = vst [vmem:[%s2127_s3 + $0x110] sm:$0xff] %v1675_v49  ;;  %v1690_v54 = vadd.f32 %v1437_v46, %v1671_v41  ;;  %v1159_v62 = vmul.f32 %v962_v47, %v962_v47 }
  0xf9   :  { %1024 = vst [vmem:[%s2127_s3] sm:$0xff] %v960_v51  ;;  %v961_v55 = vadd.f32 %v1671_v41, %v506_v48  ;;  %1056 = vst [vmem:[%s2127_s3 + $0x100] sm:$0xff] %v1679_v52  ;;  %v1701_v56 = vadd.f32 %v1671_v41, %v634_v50  ;;  %v1157_v57 = vmul.f32 %v960_v51, %v960_v51 }
  0xfa   :  { %1027 = vst [vmem:[%s2127_s3 + $0x18] sm:$0xff] %v963_v53  ;;  %1059 = vst [vmem:[%s2127_s3 + $0x118] sm:$0xff] %v1690_v54  ;;  %v1160_v63 = vmul.f32 %v963_v53, %v963_v53 }
  0xfb   :  { %1025 = vst [vmem:[%s2127_s3 + $0x8] sm:$0xff] %v961_v55  ;;  %v1088_v58 = vadd.f32 %v961_v55, %v960_v51  ;;  %v1158_v59 = vmul.f32 %v961_v55, %v961_v55  ;;  %1057 = vst [vmem:[%s2127_s3 + $0x108] sm:$0xff] %v1701_v56 }
  0xfd   :  { %v1408_v60 = vpop.f32.mrb[4].mxu0  ;;  %v1440_v61 = vpop.f32.mrb[4].mxu1  ;;  %v1089_v2 = vadd.f32 %v1088_v58, %v962_v47  ;;  %v1221_v3 = vadd.f32 %v1158_v59, %v1157_v57 }
  0xfe   :  { %v519_v0 = vpop.f32.mrb[5].mxu0  ;;  %v647_v1 = vpop.f32.mrb[5].mxu1  ;;  %v966_v6 = vadd.f32 %v1408_v60, %v1671_v41  ;;  %v1719_v8 = vadd.f32 %v1440_v61, %v1671_v41 }
  0xff   :  { %v1409_v4 = vpop.f32.mrb[6].mxu0  ;;  %v1441_v5 = vpop.f32.mrb[6].mxu1  ;;  %v1090_v10 = vadd.f32 %v1089_v2, %v963_v53  ;;  %v1222_v11 = vadd.f32 %v1221_v3, %v1159_v62  ;;  %v964_v12 = vadd.f32 %v1671_v41, %v519_v0  ;;  %v1731_v14 = vadd.f32 %v1671_v41, %v647_v1 }
 0x100   :  { %v522_v7 = vpop.f32.mrb[7].mxu0  ;;  %v650_v9 = vpop.f32.mrb[7].mxu1  ;;  %1030 = vst [vmem:[%s2127_s3 + $0x30] sm:$0xff] %v966_v6  ;;  %v967_v13 = vadd.f32 %v1409_v4, %v1671_v41  ;;  %1062 = vst [vmem:[%s2127_s3 + $0x130] sm:$0xff] %v1719_v8  ;;  %v1745_v19 = vadd.f32 %v1441_v5, %v1671_v41  ;;  %v1163_v25 = vmul.f32 %v966_v6, %v966_v6 }
 0x101   :  { %v1223_v15 = vadd.f32 %v1222_v11, %v1160_v63  ;;  %1028 = vst [vmem:[%s2127_s3 + $0x20] sm:$0xff] %v964_v12  ;;  %v1091_v16 = vadd.f32 %v1090_v10, %v964_v12  ;;  %v1161_v17 = vmul.f32 %v964_v12, %v964_v12  ;;  %v965_v18 = vadd.f32 %v1671_v41, %v522_v7 }
 0x102   :  { %1031 = vst [vmem:[%s2127_s3 + $0x38] sm:$0xff] %v967_v13  ;;  %1060 = vst [vmem:[%s2127_s3 + $0x120] sm:$0xff] %v1731_v14  ;;  %v1755_v27 = vadd.f32 %v1671_v41, %v650_v9  ;;  %v1164_v33 = vmul.f32 %v967_v13, %v967_v13 }
 0x103   :  { %v1224_v20 = vadd.f32 %v1223_v15, %v1161_v17  ;;  %1029 = vst [vmem:[%s2127_s3 + $0x28] sm:$0xff] %v965_v18  ;;  %v1092_v21 = vadd.f32 %v1091_v16, %v965_v18  ;;  %v1162_v22 = vmul.f32 %v965_v18, %v965_v18  ;;  %1063 = vst [vmem:[%s2127_s3 + $0x138] sm:$0xff] %v1745_v19 }
 0x104   :  { %1061 = vst [vmem:[%s2127_s3 + $0x128] sm:$0xff] %v1755_v27 }
 0x105   :  { %v1412_v23 = vpop.f32.mrb[8].mxu0  ;;  %v1444_v24 = vpop.f32.mrb[8].mxu1  ;;  %v1093_v29 = vadd.f32 %v1092_v21, %v966_v6  ;;  %v1225_v30 = vadd.f32 %v1224_v20, %v1162_v22 }
 0x106   :  { %v535_v26 = vpop.f32.mrb[9].mxu0  ;;  %v663_v28 = vpop.f32.mrb[9].mxu1  ;;  %v970_v34 = vadd.f32 %v1412_v23, %v1671_v41  ;;  %v1763_v36 = vadd.f32 %v1444_v24, %v1671_v41 }
 0x107   :  { %v1413_v31 = vpop.f32.mrb[10].mxu0  ;;  %v1445_v32 = vpop.f32.mrb[10].mxu1  ;;  %v1094_v38 = vadd.f32 %v1093_v29, %v967_v13  ;;  %v1226_v39 = vadd.f32 %v1225_v30, %v1163_v25  ;;  %v968_v40 = vadd.f32 %v1671_v41, %v535_v26  ;;  %v1775_v43 = vadd.f32 %v1671_v41, %v663_v28 }
 0x108   :  { %v538_v35 = vpop.f32.mrb[11].mxu0  ;;  %v666_v37 = vpop.f32.mrb[11].mxu1  ;;  %1034 = vst [vmem:[%s2127_s3 + $0x50] sm:$0xff] %v970_v34  ;;  %v971_v42 = vadd.f32 %v1413_v31, %v1671_v41  ;;  %1066 = vst [vmem:[%s2127_s3 + $0x150] sm:$0xff] %v1763_v36  ;;  %v1167_v48 = vmul.f32 %v970_v34, %v970_v34  ;;  %v1792_v59 = vadd.f32 %v1445_v32, %v1671_v41 }
 0x109   :  { %v1227_v44 = vadd.f32 %v1226_v39, %v1164_v33  ;;  %1032 = vst [vmem:[%s2127_s3 + $0x40] sm:$0xff] %v968_v40  ;;  %v1095_v45 = vadd.f32 %v1094_v38, %v968_v40  ;;  %v1165_v46 = vmul.f32 %v968_v40, %v968_v40  ;;  %v969_v47 = vadd.f32 %v1671_v41, %v538_v35 }
 0x10a   :  { %1035 = vst [vmem:[%s2127_s3 + $0x58] sm:$0xff] %v971_v42  ;;  %1064 = vst [vmem:[%s2127_s3 + $0x140] sm:$0xff] %v1775_v43  ;;  %v1795_v60 = vadd.f32 %v1671_v41, %v666_v37  ;;  %v1168_v2 = vmul.f32 %v971_v42, %v971_v42 }
 0x10b   :  { %v1228_v50 = vadd.f32 %v1227_v44, %v1165_v46  ;;  %1033 = vst [vmem:[%s2127_s3 + $0x48] sm:$0xff] %v969_v47  ;;  %v1096_v51 = vadd.f32 %v1095_v45, %v969_v47  ;;  %v1166_v53 = vmul.f32 %v969_v47, %v969_v47  ;;  %1067 = vst [vmem:[%s2127_s3 + $0x158] sm:$0xff] %v1792_v59 }
 0x10c   :  { %1065 = vst [vmem:[%s2127_s3 + $0x148] sm:$0xff] %v1795_v60 }
 0x10d   :  { %v1416_v55 = vpop.f32.mrb[12].mxu0  ;;  %v1448_v57 = vpop.f32.mrb[12].mxu1  ;;  %v1097_v62 = vadd.f32 %v1096_v51, %v970_v34  ;;  %v1229_v63 = vadd.f32 %v1228_v50, %v1166_v53 }
 0x10e   :  { %v551_v58 = vpop.f32.mrb[13].mxu0  ;;  %v679_v61 = vpop.f32.mrb[13].mxu1  ;;  %v974_v3 = vadd.f32 %v1416_v55, %v1671_v41  ;;  %v1812_v11 = vadd.f32 %v1448_v57, %v1671_v41 }
 0x10f   :  { %v1417_v0 = vpop.f32.mrb[14].mxu0  ;;  %v1449_v1 = vpop.f32.mrb[14].mxu1  ;;  %v1230_v6 = vadd.f32 %v1229_v63, %v1167_v48  ;;  %v972_v7 = vadd.f32 %v1671_v41, %v551_v58  ;;  %v1098_v9 = vadd.f32 %v1097_v62, %v971_v42  ;;  %v1815_v12 = vadd.f32 %v1671_v41, %v679_v61 }
 0x110   :  { %v554_v4 = vpop.f32.mrb[15].mxu0  ;;  %v682_v5 = vpop.f32.mrb[15].mxu1  ;;  %1038 = vst [vmem:[%s2127_s3 + $0x70] sm:$0xff] %v974_v3  ;;  %v975_v10 = vadd.f32 %v1417_v0, %v1671_v41  ;;  %1070 = vst [vmem:[%s2127_s3 + $0x170] sm:$0xff] %v1812_v11  ;;  %v1171_v24 = vmul.f32 %v974_v3, %v974_v3  ;;  %v1836_v26 = vadd.f32 %v1449_v1, %v1671_v41 }
 0x111   :  { %1036 = vst [vmem:[%s2127_s3 + $0x60] sm:$0xff] %v972_v7  ;;  %v1099_v13 = vadd.f32 %v1098_v9, %v972_v7  ;;  %v1169_v15 = vmul.f32 %v972_v7, %v972_v7  ;;  %v1231_v16 = vadd.f32 %v1230_v6, %v1168_v2  ;;  %v973_v17 = vadd.f32 %v1671_v41, %v554_v4 }
 0x112   :  { %1039 = vst [vmem:[%s2127_s3 + $0x78] sm:$0xff] %v975_v10  ;;  %1068 = vst [vmem:[%s2127_s3 + $0x160] sm:$0xff] %v1815_v12  ;;  %v1839_v32 = vadd.f32 %v1671_v41, %v682_v5  ;;  %v1172_v34 = vmul.f32 %v975_v10, %v975_v10 }
 0x113   :  { %v1232_v18 = vadd.f32 %v1231_v16, %v1169_v15  ;;  %1037 = vst [vmem:[%s2127_s3 + $0x68] sm:$0xff] %v973_v17  ;;  %v1100_v20 = vadd.f32 %v1099_v13, %v973_v17  ;;  %v1170_v21 = vmul.f32 %v973_v17, %v973_v17  ;;  %1071 = vst [vmem:[%s2127_s3 + $0x178] sm:$0xff] %v1836_v26 }
 0x114   :  { %1069 = vst [vmem:[%s2127_s3 + $0x168] sm:$0xff] %v1839_v32 }
 0x115   :  { %v1420_v22 = vpop.f32.mrb[16].mxu0  ;;  %v1452_v23 = vpop.f32.mrb[16].mxu1  ;;  %v1101_v29 = vadd.f32 %v1100_v20, %v974_v3  ;;  %v1233_v30 = vadd.f32 %v1232_v18, %v1170_v21 }
 0x116   :  { %v567_v25 = vpop.f32.mrb[17].mxu0  ;;  %v695_v28 = vpop.f32.mrb[17].mxu1  ;;  %v978_v35 = vadd.f32 %v1420_v22, %v1671_v41  ;;  %v1847_v38 = vadd.f32 %v1452_v23, %v1671_v41 }
 0x117   :  { %v1421_v31 = vpop.f32.mrb[18].mxu0  ;;  %v1453_v33 = vpop.f32.mrb[18].mxu1  ;;  %v1234_v40 = vadd.f32 %v1233_v30, %v1171_v24  ;;  %v976_v42 = vadd.f32 %v1671_v41, %v567_v25  ;;  %v1102_v44 = vadd.f32 %v1101_v29, %v975_v10  ;;  %v1873_v63 = vadd.f32 %v1671_v41, %v695_v28 }
 0x118   :  { %v570_v37 = vpop.f32.mrb[19].mxu0  ;;  %v698_v39 = vpop.f32.mrb[19].mxu1  ;;  %1042 = vst [vmem:[%s2127_s3 + $0x90] sm:$0xff] %v978_v35  ;;  %v979_v45 = vadd.f32 %v1421_v31, %v1671_v41  ;;  %1074 = vst [vmem:[%s2127_s3 + $0x190] sm:$0xff] %v1847_v38  ;;  %v1175_v51 = vmul.f32 %v978_v35, %v978_v35  ;;  %v1876_v0 = vadd.f32 %v1453_v33, %v1671_v41 }
 0x119   :  { %1040 = vst [vmem:[%s2127_s3 + $0x80] sm:$0xff] %v976_v42  ;;  %v1103_v46 = vadd.f32 %v1102_v44, %v976_v42  ;;  %v1173_v47 = vmul.f32 %v976_v42, %v976_v42  ;;  %v1235_v48 = vadd.f32 %v1234_v40, %v1172_v34  ;;  %v977_v50 = vadd.f32 %v1671_v41, %v570_v37 }
 0x11a   :  { %1043 = vst [vmem:[%s2127_s3 + $0x98] sm:$0xff] %v979_v45  ;;  %v1879_v1 = vadd.f32 %v1671_v41, %v698_v39  ;;  %v1176_v7 = vmul.f32 %v979_v45, %v979_v45  ;;  %1072 = vst [vmem:[%s2127_s3 + $0x180] sm:$0xff] %v1873_v63 }
 0x11b   :  { %v1236_v53 = vadd.f32 %v1235_v48, %v1173_v47  ;;  %1041 = vst [vmem:[%s2127_s3 + $0x88] sm:$0xff] %v977_v50  ;;  %v1104_v55 = vadd.f32 %v1103_v46, %v977_v50  ;;  %v1174_v57 = vmul.f32 %v977_v50, %v977_v50  ;;  %1075 = vst [vmem:[%s2127_s3 + $0x198] sm:$0xff] %v1876_v0 }
 0x11c   :  { %1073 = vst [vmem:[%s2127_s3 + $0x188] sm:$0xff] %v1879_v1 }
 0x11d   :  { %v1424_v58 = vpop.f32.mrb[20].mxu0  ;;  %v1456_v61 = vpop.f32.mrb[20].mxu1  ;;  %v1105_v3 = vadd.f32 %v1104_v55, %v978_v35  ;;  %v1237_v4 = vadd.f32 %v1236_v53, %v1174_v57 }
 0x11e   :  { %v583_v62 = vpop.f32.mrb[21].mxu0  ;;  %v711_v2 = vpop.f32.mrb[21].mxu1  ;;  %v982_v9 = vadd.f32 %v1424_v58, %v1671_v41  ;;  %v1900_v20 = vadd.f32 %v1456_v61, %v1671_v41 }
 0x11f   :  { %v1425_v5 = vpop.f32.mrb[22].mxu0  ;;  %v1457_v6 = vpop.f32.mrb[22].mxu1  ;;  %v1238_v15 = vadd.f32 %v1237_v4, %v1175_v51  ;;  %v980_v16 = vadd.f32 %v1671_v41, %v583_v62  ;;  %v1106_v17 = vadd.f32 %v1105_v3, %v979_v45  ;;  %v1917_v35 = vadd.f32 %v1671_v41, %v711_v2 }
 0x120   :  { %v586_v10 = vpop.f32.mrb[23].mxu0  ;;  %v714_v13 = vpop.f32.mrb[23].mxu1  ;;  %1046 = vst [vmem:[%s2127_s3 + $0xb0] sm:$0xff] %v982_v9  ;;  %v983_v18 = vadd.f32 %v1425_v5, %v1671_v41  ;;  %v1179_v25 = vmul.f32 %v982_v9, %v982_v9  ;;  %1078 = vst [vmem:[%s2127_s3 + $0x1b0] sm:$0xff] %v1900_v20  ;;  %v1920_v37 = vadd.f32 %v1457_v6, %v1671_v41 }
 0x121   :  { %1044 = vst [vmem:[%s2127_s3 + $0xa0] sm:$0xff] %v980_v16  ;;  %v1107_v21 = vadd.f32 %v1106_v17, %v980_v16  ;;  %v1177_v22 = vmul.f32 %v980_v16, %v980_v16  ;;  %v1239_v23 = vadd.f32 %v1238_v15, %v1176_v7  ;;  %v981_v24 = vadd.f32 %v1671_v41, %v586_v10 }
 0x122   :  { %1047 = vst [vmem:[%s2127_s3 + $0xb8] sm:$0xff] %v983_v18  ;;  %v1923_v45 = vadd.f32 %v1671_v41, %v714_v13  ;;  %v1180_v47 = vmul.f32 %v983_v18, %v983_v18  ;;  %1076 = vst [vmem:[%s2127_s3 + $0x1a0] sm:$0xff] %v1917_v35 }
 0x123   :  { %v1240_v28 = vadd.f32 %v1239_v23, %v1177_v22  ;;  %1045 = vst [vmem:[%s2127_s3 + $0xa8] sm:$0xff] %v981_v24  ;;  %v1108_v29 = vadd.f32 %v1107_v21, %v981_v24  ;;  %v1178_v30 = vmul.f32 %v981_v24, %v981_v24  ;;  %1079 = vst [vmem:[%s2127_s3 + $0x1b8] sm:$0xff] %v1920_v37 }
 0x124   :  { %1077 = vst [vmem:[%s2127_s3 + $0x1a8] sm:$0xff] %v1923_v45 }
 0x125   :  { %v1428_v31 = vpop.f32.mrb[24].mxu0  ;;  %v1460_v33 = vpop.f32.mrb[24].mxu1  ;;  %v1109_v40 = vadd.f32 %v1108_v29, %v982_v9  ;;  %v1241_v42 = vadd.f32 %v1240_v28, %v1178_v30 }
 0x126   :  { %v599_v34 = vpop.f32.mrb[25].mxu0  ;;  %v727_v39 = vpop.f32.mrb[25].mxu1  ;;  %v986_v48 = vadd.f32 %v1428_v31, %v1671_v41  ;;  %v1944_v61 = vadd.f32 %v1460_v33, %v1671_v41 }
 0x127   :  { %v1429_v44 = vpop.f32.mrb[26].mxu0  ;;  %v1461_v46 = vpop.f32.mrb[26].mxu1  ;;  %v1242_v53 = vadd.f32 %v1241_v42, %v1179_v25  ;;  %v984_v55 = vadd.f32 %v1671_v41, %v599_v34  ;;  %v1110_v57 = vadd.f32 %v1109_v40, %v983_v18  ;;  %v1961_v16 = vadd.f32 %v1671_v41, %v727_v39 }
 0x128   :  { %v602_v50 = vpop.f32.mrb[27].mxu0  ;;  %v730_v51 = vpop.f32.mrb[27].mxu1  ;;  %1050 = vst [vmem:[%s2127_s3 + $0xd0] sm:$0xff] %v986_v48  ;;  %v987_v58 = vadd.f32 %v1429_v44, %v1671_v41  ;;  %v1183_v5 = vmul.f32 %v986_v48, %v986_v48  ;;  %1082 = vst [vmem:[%s2127_s3 + $0x1d0] sm:$0xff] %v1944_v61  ;;  %v1964_v17 = vadd.f32 %v1461_v46, %v1671_v41 }
 0x129   :  { %1048 = vst [vmem:[%s2127_s3 + $0xc0] sm:$0xff] %v984_v55  ;;  %v1111_v62 = vadd.f32 %v1110_v57, %v984_v55  ;;  %v1181_v2 = vmul.f32 %v984_v55, %v984_v55  ;;  %v1243_v3 = vadd.f32 %v1242_v53, %v1180_v47  ;;  %v985_v4 = vadd.f32 %v1671_v41, %v602_v50 }
 0x12a   :  { %1051 = vst [vmem:[%s2127_s3 + $0xd8] sm:$0xff] %v987_v58  ;;  %v1967_v24 = vadd.f32 %v1671_v41, %v730_v51  ;;  %v1184_v28 = vmul.f32 %v987_v58, %v987_v58  ;;  %1080 = vst [vmem:[%s2127_s3 + $0x1c0] sm:$0xff] %v1961_v16 }
 0x12b   :  { %v1244_v6 = vadd.f32 %v1243_v3, %v1181_v2  ;;  %1049 = vst [vmem:[%s2127_s3 + $0xc8] sm:$0xff] %v985_v4  ;;  %v1112_v7 = vadd.f32 %v1111_v62, %v985_v4  ;;  %v1182_v9 = vmul.f32 %v985_v4, %v985_v4  ;;  %1083 = vst [vmem:[%s2127_s3 + $0x1d8] sm:$0xff] %v1964_v17 }
 0x12c   :  { %1081 = vst [vmem:[%s2127_s3 + $0x1c8] sm:$0xff] %v1967_v24 }
 0x12d   :  { %v1432_v10 = vpop.f32.mrb[28].mxu0  ;;  %v1464_v13 = vpop.f32.mrb[28].mxu1  ;;  %v1113_v21 = vadd.f32 %v1112_v7, %v986_v48  ;;  %v1245_v22 = vadd.f32 %v1244_v6, %v1182_v9  ;;  %v1189_v7 = vmul.f32 %v1679_v52, %v1679_v52 }
 0x12e   :  { %v615_v15 = vpop.f32.mrb[29].mxu0  ;;  %v743_v18 = vpop.f32.mrb[29].mxu1  ;;  %v990_v29 = vadd.f32 %v1432_v10, %v1671_v41  ;;  %v1988_v42 = vadd.f32 %v1464_v13, %v1671_v41 }
 0x12f   :  { %v1433_v23 = vpop.f32.mrb[30].mxu0  ;;  %v1465_v25 = vpop.f32.mrb[30].mxu1  ;;  %v1246_v33 = vadd.f32 %v1245_v22, %v1183_v5  ;;  %v988_v34 = vadd.f32 %v1671_v41, %v615_v15  ;;  %v1114_v39 = vadd.f32 %v1113_v21, %v987_v58  ;;  %v2005_v55 = vadd.f32 %v1671_v41, %v743_v18 }
 0x130   :  { %v618_v30 = vpop.f32.mrb[31].mxu0  ;;  %v746_v31 = vpop.f32.mrb[31].mxu1  ;;  %1054 = vst [vmem:[%s2127_s3 + $0xf0] sm:$0xff] %v990_v29  ;;  %v991_v40 = vadd.f32 %v1433_v23, %v1671_v41  ;;  %1086 = vst [vmem:[%s2127_s3 + $0x1f0] sm:$0xff] %v1988_v42  ;;  %v2008_v57 = vadd.f32 %v1465_v25, %v1671_v41  ;;  %v1187_v58 = vmul.f32 %v990_v29, %v990_v29 }
 0x131   :  { %1052 = vst [vmem:[%s2127_s3 + $0xe0] sm:$0xff] %v988_v34  ;;  %v1115_v44 = vadd.f32 %v1114_v39, %v988_v34  ;;  %v1185_v46 = vmul.f32 %v988_v34, %v988_v34  ;;  %v1247_v47 = vadd.f32 %v1246_v33, %v1184_v28  ;;  %v989_v48 = vadd.f32 %v1671_v41, %v618_v30 }
 0x132   :  { %1055 = vst [vmem:[%s2127_s3 + $0xf8] sm:$0xff] %v991_v40  ;;  %v2011_v3 = vadd.f32 %v1671_v41, %v746_v31  ;;  %1084 = vst [vmem:[%s2127_s3 + $0x1e0] sm:$0xff] %v2005_v55  ;;  %v1188_v4 = vmul.f32 %v991_v40, %v991_v40  ;;  %v1190_v15 = vmul.f32 %v1701_v56, %v1701_v56 }
 0x133   :  { %v1248_v50 = vadd.f32 %v1247_v47, %v1185_v46  ;;  %1053 = vst [vmem:[%s2127_s3 + $0xe8] sm:$0xff] %v989_v48  ;;  %v1116_v51 = vadd.f32 %v1115_v44, %v989_v48  ;;  %v1186_v53 = vmul.f32 %v989_v48, %v989_v48  ;;  %1087 = vst [vmem:[%s2127_s3 + $0x1f8] sm:$0xff] %v2008_v57 }
 0x134   :  { %1085 = vst [vmem:[%s2127_s3 + $0x1e8] sm:$0xff] %v2011_v3  ;;  %v1191_v18 = vmul.f32 %v1675_v49, %v1675_v49  ;;  %v1192_v23 = vmul.f32 %v1690_v54, %v1690_v54  ;;  %v1194_v33 = vmul.f32 %v1755_v27, %v1755_v27 }
 0x135   :  { %v1117_v62 = vadd.f32 %v1116_v51, %v990_v29  ;;  %v1249_v2 = vadd.f32 %v1248_v50, %v1186_v53  ;;  %v1198_v50 = vmul.f32 %v1795_v60, %v1795_v60 }
 0x137   :  { %v1250_v5 = vadd.f32 %v1249_v2, %v1187_v58  ;;  %v1118_v6 = vadd.f32 %v1117_v62, %v991_v40 }
 0x139   :  { %v1119_v41 = vadd.f32 %v1118_v6, %v1679_v52  ;;  %v1251_v9 = vadd.f32 %v1250_v5, %v1188_v4  ;;  %v1193_v52 = vmul.f32 %v1731_v14, %v1731_v14  ;;  %v1202_v6 = vmul.f32 %v1839_v32, %v1839_v32 }
 0x13b   :  { %v1252_v10 = vadd.f32 %v1251_v9, %v1189_v7  ;;  %v1120_v13 = vadd.f32 %v1119_v41, %v1701_v56 }
 0x13d   :  { %v1121_v21 = vadd.f32 %v1120_v13, %v1675_v49  ;;  %v1253_v22 = vadd.f32 %v1252_v10, %v1190_v15  ;;  %v1195_v49 = vmul.f32 %v1719_v8, %v1719_v8 }
 0x13f   :  { %v1254_v25 = vadd.f32 %v1253_v22, %v1191_v18  ;;  %v1122_v28 = vadd.f32 %v1121_v21, %v1690_v54  ;;  %v1196_v54 = vmul.f32 %v1745_v19, %v1745_v19  ;;  %v1206_v21 = vmul.f32 %v1879_v1, %v1879_v1 }
 0x141   :  { %v1123_v29 = vadd.f32 %v1122_v28, %v1731_v14  ;;  %v1255_v30 = vadd.f32 %v1254_v25, %v1192_v23  ;;  %v1197_v14 = vmul.f32 %v1775_v43, %v1775_v43 }
 0x143   :  { %v1256_v31 = vadd.f32 %v1255_v30, %v1193_v52  ;;  %v1124_v56 = vadd.f32 %v1123_v29, %v1755_v27 }
 0x145   :  { %v1125_v34 = vadd.f32 %v1124_v56, %v1719_v8  ;;  %v1257_v39 = vadd.f32 %v1256_v31, %v1194_v33  ;;  %v1199_v8 = vmul.f32 %v1763_v36, %v1763_v36  ;;  %v1210_v31 = vmul.f32 %v1923_v45, %v1923_v45 }
 0x147   :  { %v1258_v40 = vadd.f32 %v1257_v39, %v1195_v49  ;;  %v1126_v44 = vadd.f32 %v1125_v34, %v1745_v19  ;;  %v1200_v19 = vmul.f32 %v1792_v59, %v1792_v59 }
 0x149   :  { %v1127_v46 = vadd.f32 %v1126_v44, %v1775_v43  ;;  %v1259_v47 = vadd.f32 %v1258_v40, %v1196_v54  ;;  %v1201_v43 = vmul.f32 %v1815_v12, %v1815_v12  ;;  %v1214_v44 = vmul.f32 %v1967_v24, %v1967_v24 }
 0x14b   :  { %v1260_v48 = vadd.f32 %v1259_v47, %v1197_v14  ;;  %v1128_v27 = vadd.f32 %v1127_v46, %v1795_v60 }
 0x14d   :  { %v1129_v51 = vadd.f32 %v1128_v27, %v1763_v36  ;;  %v1261_v53 = vadd.f32 %v1260_v48, %v1198_v50  ;;  %v1203_v36 = vmul.f32 %v1812_v11, %v1812_v11 }
 0x14f   :  { %v1262_v58 = vadd.f32 %v1261_v53, %v1199_v8  ;;  %v1130_v62 = vadd.f32 %v1129_v51, %v1792_v59  ;;  %v1204_v59 = vmul.f32 %v1836_v26, %v1836_v26  ;;  %v1218_v51 = vmul.f32 %v2011_v3, %v2011_v3 }
 0x151   :  { %v1131_v2 = vadd.f32 %v1130_v62, %v1815_v12  ;;  %v1263_v4 = vadd.f32 %v1262_v58, %v1200_v19  ;;  %v1205_v12 = vmul.f32 %v1873_v63, %v1873_v63 }
 0x153   :  { %v1264_v5 = vadd.f32 %v1263_v4, %v1201_v43  ;;  %v1132_v60 = vadd.f32 %v1131_v2, %v1839_v32 }
 0x155   :  { %v1133_v7 = vadd.f32 %v1132_v60, %v1812_v11  ;;  %v1265_v41 = vadd.f32 %v1264_v5, %v1202_v6  ;;  %v1207_v11 = vmul.f32 %v1847_v38, %v1847_v38  ;;  %v1290_v5 = vlaneseq }
 0x157   :  { %v1266_v9 = vadd.f32 %v1265_v41, %v1203_v36  ;;  %v1134_v10 = vadd.f32 %v1133_v7, %v1836_v26  ;;  %v1208_v26 = vmul.f32 %v1876_v0, %v1876_v0  ;;  %v1291_v7 = vshrl.u32 %v1290_v5, 7 }
 0x159   :  { %v1135_v13 = vadd.f32 %v1134_v10, %v1873_v63  ;;  %v1267_v15 = vadd.f32 %v1266_v9, %v1204_v59  ;;  %v1209_v63 = vmul.f32 %v1917_v35, %v1917_v35  ;;  %vm1293_vm0 = vcmp.eq.s32.totalorder %v1291_v7, 1 }
 0x15a   :  { %vm1292_vm1 = vcmp.eq.s32.totalorder %v1291_v7, 0 }
 0x15b   :  { %v1268_v18 = vadd.f32 %v1267_v15, %v1205_v12  ;;  %v1136_v32 = vadd.f32 %v1135_v13, %v1879_v1 }
 0x15d   :  { %v1137_v22 = vadd.f32 %v1136_v32, %v1847_v38  ;;  %v1269_v23 = vadd.f32 %v1268_v18, %v1206_v21  ;;  %v1211_v38 = vmul.f32 %v1900_v20, %v1900_v20 }
 0x15f   :  { %v1270_v25 = vadd.f32 %v1269_v23, %v1207_v11  ;;  %v1138_v28 = vadd.f32 %v1137_v22, %v1876_v0  ;;  %v1212_v0 = vmul.f32 %v1920_v37, %v1920_v37 }
 0x161   :  { %v1139_v52 = vadd.f32 %v1138_v28, %v1917_v35  ;;  %v1271_v29 = vadd.f32 %v1270_v25, %v1208_v26  ;;  %v1213_v35 = vmul.f32 %v1961_v16, %v1961_v16 }
 0x163   :  { %v1272_v30 = vadd.f32 %v1271_v29, %v1209_v63  ;;  %v1140_v1 = vadd.f32 %v1139_v52, %v1923_v45 }
 0x165   :  { %v1141_v56 = vadd.f32 %v1140_v1, %v1900_v20  ;;  %v1273_v33 = vadd.f32 %v1272_v30, %v1210_v31  ;;  %v1215_v20 = vmul.f32 %v1944_v61, %v1944_v61 }
 0x167   :  { %v1274_v49 = vadd.f32 %v1273_v33, %v1211_v38  ;;  %v1142_v34 = vadd.f32 %v1141_v56, %v1920_v37  ;;  %v1216_v37 = vmul.f32 %v1964_v17, %v1964_v17 }
 0x169   :  { %v1143_v39 = vadd.f32 %v1142_v34, %v1961_v16  ;;  %v1275_v54 = vadd.f32 %v1274_v49, %v1212_v0  ;;  %v1217_v16 = vmul.f32 %v2005_v55, %v2005_v55 }
 0x16b   :  { %v1276_v40 = vadd.f32 %v1275_v54, %v1213_v35  ;;  %v1144_v45 = vadd.f32 %v1143_v39, %v1967_v24 }
 0x16d   :  { %v1145_v14 = vadd.f32 %v1144_v45, %v1944_v61  ;;  %v1277_v46 = vadd.f32 %v1276_v40, %v1214_v44  ;;  %v1219_v61 = vmul.f32 %v1988_v42, %v1988_v42 }
 0x16f   :  { %v1278_v47 = vadd.f32 %v1277_v46, %v1215_v20  ;;  %v1146_v48 = vadd.f32 %v1145_v14, %v1964_v17  ;;  %v1220_v17 = vmul.f32 %v2008_v57, %v2008_v57 }
 0x171   :  { %v1147_v27 = vadd.f32 %v1146_v48, %v2005_v55  ;;  %v1279_v50 = vadd.f32 %v1278_v47, %v1216_v37 }
 0x173   :  { %v1280_v8 = vadd.f32 %v1279_v50, %v1217_v16  ;;  %v1148_v24 = vadd.f32 %v1147_v27, %v2011_v3 }
 0x175   :  { %v1149_v53 = vadd.f32 %v1148_v24, %v1988_v42  ;;  %v1281_v19 = vadd.f32 %v1280_v8, %v1218_v51 }
 0x177   :  { %v1150_v58 = vadd.f32 %v1149_v53, %v2008_v57  ;;  %v1282_v62 = vadd.f32 %v1281_v19, %v1219_v61 }
 0x179   :  { %v1151_v55 = vrot.slane %v1150_v58, 4  ;;  %v1283_v43 = vadd.f32 %v1282_v62, %v1220_v17 }
 0x17b   :  { %v1152_v2 = vadd.f32 %v1151_v55, %v1150_v58  ;;  %v1284_v4 = vrot.slane %v1283_v43, 4 }
 0x17d   :  { %v1153_v60 = vrot.slane %v1152_v2, 2  ;;  %v1285_v6 = vadd.f32 %v1284_v4, %v1283_v43 }
 0x17f   :  { %v1154_v3 = vadd.f32 %v1153_v60, %v1152_v2  ;;  %v1286_v36 = vrot.slane %v1285_v6, 2 }
 0x181   :  { %v1287_v41 = vadd.f32 %v1286_v36, %v1285_v6  ;;  %v1155_v59 = vrot.slane %v1154_v3, 1 }
 0x183   :  { %v1288_v42 = vrot.slane %v1287_v41, 1  ;;  %v1156_v10 = vadd.f32 %v1155_v59, %v1154_v3 }
 0x185   :  { %v1289_v9 = vadd.f32 %v1288_v42, %v1287_v41 }
 0x187   :  { %v1294_v12 = vsel %vm1293_vm0, %v1289_v9, 0.0 }
 0x188   :  { %v1295_v57 = vsel %vm1292_vm1, %v1156_v10, %v1294_v12 }
 0x189   :  { %1296 = vst [vmem:[%s2128_s4] sm:$0xff] %v1295_v57 }

</bundles_post_ra>
